<compile_context>
chip_gen: v7x
topology: tpu7x:2x2x1
jax: 0.10.0
libtpu: 0.0.40
codegen_flags: <defaults>
</compile_context>

<pallas_src>
import functools

import jax
import jax.numpy as jnp
from jax import lax
from jax.experimental import pallas as pl
from jax.experimental.pallas import tpu as pltpu


# ----------------------------------------------------------------------------
# Pallas GEMM kernel:  out[Cout, tm] = W[Cout, K] @ act(A[K, tm])
# bf16 operands, f32 activation prologue, f32 accumulation.  Single K block,
# no reduction grid axis, no scratch, no bias (added in the epilogue outside).
# ----------------------------------------------------------------------------
@functools.lru_cache(maxsize=None)
def _make_gemm_kernel(act: str):
    def kernel(w_ref, a_ref, o_ref):
        a = a_ref[...].astype(jnp.float32)
        if act == "relu":
            a = jnp.maximum(a, 0.0)
        elif act == "leaky":
            a = jnp.where(a > 0.0, a, 0.2 * a)
        o_ref[...] = jnp.dot(
            w_ref[...], a.astype(jnp.bfloat16),
            preferred_element_type=jnp.float32,
        )

    return kernel


def _round_up(x, m):
    return ((x + m - 1) // m) * m


def _pick_tm(m):
    """Per review: keep >= 4 M-blocks so each v7x core still double-buffers."""
    if m >= 16384:
        return 2048
    if m >= 8192:
        return 1024
    return 512  # m in [2048, 8192)


def gemm_w_act_a(w_mat, a_t, act="none"):
    """Y[Cout, M] = W[Cout, K] @ act(A[K, M]).  bf16 operands / f32 accumulate.

    Small M (< 2048) cannot pipeline and would be mostly padding, so it falls
    back to a plain (f32) XLA dot."""
    c_out, k = w_mat.shape
    _, m = a_t.shape

    if m < 2048:
        a = a_t
        if act == "relu":
            a = jnp.maximum(a, 0.0)
        elif act == "leaky":
            a = jnp.where(a > 0.0, a, 0.2 * a)
        return jnp.dot(w_mat, a, preferred_element_type=jnp.float32)

    tm = _pick_tm(m)
    mp = _round_up(m, tm)
    a = a_t.astype(jnp.bfloat16)
    if mp != m:
        a = jnp.pad(a, ((0, 0), (0, mp - m)))
    w_b = w_mat.astype(jnp.bfloat16)

    out = pl.pallas_call(
        _make_gemm_kernel(act),
        out_shape=jax.ShapeDtypeStruct((c_out, mp), jnp.float32),
        grid_spec=pltpu.PrefetchScalarGridSpec(
            num_scalar_prefetch=0,
            grid=(mp // tm,),
            in_specs=[
                pl.BlockSpec((c_out, k), lambda i: (0, 0)),  # weights (resident)
                pl.BlockSpec((k, tm), lambda i: (0, i)),     # patch columns
            ],
            out_specs=pl.BlockSpec((c_out, tm), lambda i: (0, i)),
        ),
        compiler_params=pltpu.CompilerParams(
            dimension_semantics=("parallel",),
            vmem_limit_bytes=32 * 1024 * 1024,
        ),
    )(w_b, a)

    if mp != m:
        out = out[:, :m]
    return out


# ----------------------------------------------------------------------------
# Conv / upsample / batchnorm helpers (channels-first glue around the kernel)
# ----------------------------------------------------------------------------
def conv2d_cf(x, w, b, stride, pad, act="none"):
    """x: (Cin, B, H, W).  w: PyTorch layout (Cout, Cin, kh, kw).  b: (Cout,)."""
    cin, bsz, h, wdt = x.shape
    cout, _, kh, kw = w.shape
    xp = jnp.pad(x, ((0, 0), (0, 0), (pad, pad), (pad, pad)))
    oh = (h + 2 * pad - kh) // stride + 1
    ow = (wdt + 2 * pad - kw) // stride + 1

    taps = []
    for i in range(kh):
        for j in range(kw):
            taps.append(
                xp[:, :, i : i + stride * (oh - 1) + 1 : stride,
                          j : j + stride * (ow - 1) + 1 : stride]
            )
    # K ordering = (Cin, kh, kw), matching w.reshape(Cout, Cin*kh*kw).
    a_t = jnp.stack(taps, axis=1).reshape(cin * kh * kw, bsz * oh * ow)
    w_mat = w.reshape(cout, cin * kh * kw)

    out = gemm_w_act_a(w_mat, a_t, act=act)          # (Cout, M)
    out = out + b[:, None]                           # bias epilogue (XLA-fused)
    return out.reshape(cout, bsz, oh, ow)


def _phase_w(w_t, py, px):
    """2x2 conv kernel (Conv2d layout (Cout,Cin,2,2)) of output phase (py,px)
    of ConvTranspose2d(k=4, s=2, p=1).  w_t: PyTorch layout (Cin, Cout, 4, 4)."""
    ky = [3 - py, 1 - py]
    kx = [3 - px, 1 - px]
    rows = [jnp.stack([w_t[:, :, ky[d], kx[e]] for e in range(2)], axis=-1)
            for d in range(2)]
    k2 = jnp.stack(rows, axis=-2)                     # (Cin, Cout, 2, 2)
    return jnp.transpose(k2, (1, 0, 2, 3))            # (Cout, Cin, 2, 2)


def conv_transpose2d_s2_k4_p1_cf(x, w_t, b, act="relu"):
    """ConvTranspose2d(kernel=4, stride=2, padding=1) via sub-pixel (phase)
    decomposition: 4 phase 2x2 convs packed as one stride-1 3x3 conv with
    4*Cout output channels, then a 2x2 output interleave.  No dilated tensor.
    x: (Cin, B, H, W).  w_t: PyTorch layout (Cin, Cout, 4, 4)."""
    cin, bsz, h, wdt = x.shape
    cout = w_t.shape[1]

    blocks = []
    for py in range(2):
        for px in range(2):
            k2 = _phase_w(w_t, py, px)
            k3 = jnp.zeros((cout, cin, 3, 3), w_t.dtype)
            k3 = k3.at[:, :, py:py + 2, px:px + 2].set(k2)
            blocks.append(k3)
    w_big = jnp.concatenate(blocks, axis=0)           # (4*Cout, Cin, 3, 3)
    b_big = jnp.tile(b, 4)

    y = conv2d_cf(x, w_big, b_big, stride=1, pad=1, act=act)  # (4*Cout,B,H,W)
    y = y.reshape(2, 2, cout, bsz, h, wdt)
    # out[c, b, 2m+py, 2n+px] = y[py, px, c, b, m, n]
    y = jnp.transpose(y, (2, 3, 4, 0, 5, 1)).reshape(cout, bsz, 2 * h, 2 * wdt)
    return y


def _up2x_axis(x, axis):
    """Exact PyTorch bilinear 2x upsample (align_corners=False) along one axis."""
    n = x.shape[axis]
    first = lax.slice_in_dim(x, 0, 1, axis=axis)
    last = lax.slice_in_dim(x, n - 1, n, axis=axis)
    prev = jnp.concatenate([first, lax.slice_in_dim(x, 0, n - 1, axis=axis)], axis=axis)
    nxt = jnp.concatenate([lax.slice_in_dim(x, 1, n, axis=axis), last], axis=axis)
    even = 0.75 * x + 0.25 * prev
    odd = 0.75 * x + 0.25 * nxt
    out = jnp.stack([even, odd], axis=axis + 1)
    new_shape = list(x.shape)
    new_shape[axis] = 2 * n
    return out.reshape(new_shape)


def upsample2x_bilinear_cf(x):  # (C, B, H, W)
    return _up2x_axis(_up2x_axis(x, 2), 3)


def batchnorm_cf(x, gamma, beta, eps=1e-5):
    """Training-mode BatchNorm2d on (C, B, H, W): per-channel stats over B,H,W."""
    mean = jnp.mean(x, axis=(1, 2, 3), keepdims=True)
    var = jnp.mean((x - mean) ** 2, axis=(1, 2, 3), keepdims=True)
    return (x - mean) * lax.rsqrt(var + eps) * gamma[:, None, None, None] \
        + beta[:, None, None, None]


# ----------------------------------------------------------------------------
# Parameters (deterministic init — shapes from TurbNetG.__init__)
# ----------------------------------------------------------------------------
CHANNEL_EXPONENT = 2
CHANNELS = int(2 ** CHANNEL_EXPONENT + 0.5)  # 4


def init_params(key):
    ch = CHANNELS

    def conv_p(k, cout, cin, ksz, scale=0.1):
        k1, k2 = jax.random.split(k)
        w = jax.random.normal(k1, (cout, cin, ksz, ksz), jnp.float32) * scale
        b = jax.random.normal(k2, (cout,), jnp.float32) * scale
        return w, b

    def bn_p(c):
        return jnp.ones((c,), jnp.float32), jnp.zeros((c,), jnp.float32)

    keys = jax.random.split(key, 16)
    p = {}
    p["layer1_conv"] = conv_p(keys[0], ch, 3, 4)
    p["layer2_conv"] = conv_p(keys[1], ch * 2, ch, 4); p["layer2_bn"] = bn_p(ch * 2)
    p["layer2b_conv"] = conv_p(keys[2], ch * 2, ch * 2, 4); p["layer2b_bn"] = bn_p(ch * 2)
    p["layer3_conv"] = conv_p(keys[3], ch * 4, ch * 2, 4); p["layer3_bn"] = bn_p(ch * 4)
    p["layer4_conv"] = conv_p(keys[4], ch * 8, ch * 4, 4); p["layer4_bn"] = bn_p(ch * 8)
    p["layer5_conv"] = conv_p(keys[5], ch * 8, ch * 8, 2); p["layer5_bn"] = bn_p(ch * 8)
    p["layer6_conv"] = conv_p(keys[6], ch * 8, ch * 8, 2)
    p["dlayer6_tconv"] = conv_p(keys[7], ch * 8, ch * 8, 1); p["dlayer6_bn"] = bn_p(ch * 8)
    p["dlayer5_tconv"] = conv_p(keys[8], ch * 8, ch * 16, 1); p["dlayer5_bn"] = bn_p(ch * 8)
    p["dlayer4_tconv"] = conv_p(keys[9], ch * 4, ch * 16, 3); p["dlayer4_bn"] = bn_p(ch * 4)
    p["dlayer3_tconv"] = conv_p(keys[10], ch * 2, ch * 8, 3); p["dlayer3_bn"] = bn_p(ch * 2)
    p["dlayer2b_tconv"] = conv_p(keys[11], ch * 2, ch * 4, 3); p["dlayer2b_bn"] = bn_p(ch * 2)
    p["dlayer2_tconv"] = conv_p(keys[12], ch, ch * 4, 3); p["dlayer2_bn"] = bn_p(ch)
    # ConvTranspose2d(ch*2, 3, 4, 2, 1): PyTorch weight layout (Cin, Cout, kh, kw)
    k1, k2 = jax.random.split(keys[13])
    p["dlayer1_tconv"] = (
        jax.random.normal(k1, (ch * 2, 3, 4, 4), jnp.float32) * 0.1,
        jax.random.normal(k2, (3,), jnp.float32) * 0.1,
    )
    return p


# ----------------------------------------------------------------------------
# Forward pass (internal layout: (C, B, H, W))
# ----------------------------------------------------------------------------
def turbnetg_forward(params, x_nchw):
    p = params
    x = jnp.transpose(x_nchw, (1, 0, 2, 3))  # (B,C,H,W) -> (C,B,H,W)

    def enc(inp, name, pad, bn=True):
        w, b = p[name + "_conv"]
        y = conv2d_cf(inp, w, b, stride=2, pad=pad, act="leaky")  # LeakyReLU fused
        if bn:
            g, be = p[name + "_bn"]
            y = batchnorm_cf(y, g, be)
        return y

    def dec(inp, name, pad):
        y = jnp.maximum(inp, 0.0)            # ReLU (before the upsample, as in PyTorch)
        y = upsample2x_bilinear_cf(y)
        w, b = p[name + "_tconv"]
        y = conv2d_cf(y, w, b, stride=1, pad=pad, act="none")
        g, be = p[name + "_bn"]
        return batchnorm_cf(y, g, be)

    out1 = conv2d_cf(x, *p["layer1_conv"], stride=2, pad=1, act="none")
    out2 = enc(out1, "layer2", pad=1)
    out2b = enc(out2, "layer2b", pad=1)
    out3 = enc(out2b, "layer3", pad=1)
    out4 = enc(out3, "layer4", pad=1)
    out5 = enc(out4, "layer5", pad=0)
    out6 = enc(out5, "layer6", pad=0, bn=False)

    dout6 = dec(out6, "dlayer6", pad=0)
    dout5 = dec(jnp.concatenate([dout6, out5], axis=0), "dlayer5", pad=0)
    dout4 = dec(jnp.concatenate([dout5, out4], axis=0), "dlayer4", pad=1)
    dout3 = dec(jnp.concatenate([dout4, out3], axis=0), "dlayer3", pad=1)
    dout2b = dec(jnp.concatenate([dout3, out2b], axis=0), "dlayer2b", pad=1)
    dout2 = dec(jnp.concatenate([dout2b, out2], axis=0), "dlayer2", pad=1)

    w_t, b_t = p["dlayer1_tconv"]
    dout1 = conv_transpose2d_s2_k4_p1_cf(
        jnp.concatenate([dout2, out1], axis=0), w_t, b_t, act="relu"  # ReLU fused
    )
    return jnp.transpose(dout1, (1, 0, 2, 3))  # (C,B,H,W) -> (B,C,H,W)


# ----------------------------------------------------------------------------
if __name__ == "__main__":
    key = jax.random.PRNGKey(0)
    pkey, xkey = jax.random.split(key)
    params = init_params(pkey)

    # Smallest spatial size the architecture supports is 128 (7 stride-2 halvings).
    N, C, H, W = 2, 3, 128, 128
    x = jax.random.normal(xkey, (N, C, H, W), jnp.float32)

    fwd = jax.jit(turbnetg_forward)
    y = fwd(params, x)
    y = jax.block_until_ready(y)

    assert y.shape == (N, 3, H, W), y.shape
    assert bool(jnp.all(jnp.isfinite(y)))
    print("KERNEL_OK")
</pallas_src>

<mosaic_0001>
module attributes {stable_mosaic.version = 11 : i64} {
  func.func @kernel(%arg0: i32, %arg1: memref<4x48xbf16, #tpu.memory_space<vmem>>, %arg2: memref<48x1024xbf16, #tpu.memory_space<vmem>>, %arg3: memref<4x1024xf32, #tpu.memory_space<vmem>>) attributes {dimension_semantics = [#tpu.dimension_semantics<parallel>], iteration_bounds = array<i64: 8>, scalar_prefetch = 0 : i64, scratch_operands = 0 : i64, tpu.core_type = #tpu.core_type<tc>, window_params = [{pipeline_mode = #tpu.pipeline_mode<synchronous>, transform_indices = @transform_0, window_bounds = array<i64: 4, 48>}, {transform_indices = @transform_1, window_bounds = array<i64: 48, 1024>}, {transform_indices = @transform_2, window_bounds = array<i64: 4, 1024>}]} {
    %c0 = arith.constant 0 : index
    %c0_0 = arith.constant 0 : index
    %0 = vector.load %arg2[%c0, %c0_0] : memref<48x1024xbf16, #tpu.memory_space<vmem>>, vector<48x1024xbf16>
    %1 = arith.extf %0 : vector<48x1024xbf16> to vector<48x1024xf32>
    %c0_1 = arith.constant 0 : index
    %c0_2 = arith.constant 0 : index
    %2 = vector.load %arg1[%c0_1, %c0_2] : memref<4x48xbf16, #tpu.memory_space<vmem>>, vector<4x48xbf16>
    %3 = arith.truncf %1 : vector<48x1024xf32> to vector<48x1024xbf16>
    %cst = arith.constant dense<0.000000e+00> : vector<4x1024xf32>
    %4 = tpu.matmul %2, %3, %cst {dimension_numbers = #tpu.dot_dimension_numbers<[1], [0], [0], [1], [0, 0, 1, 1], [], []>} : vector<4x48xbf16>, vector<48x1024xbf16>, vector<4x1024xf32> -> vector<4x1024xf32>
    %c0_3 = arith.constant 0 : index
    %c0_4 = arith.constant 0 : index
    %5 = vector.load %arg3[%c0_3, %c0_4] : memref<4x1024xf32, #tpu.memory_space<vmem>>, vector<4x1024xf32>
    tpu.vector_store %arg3[%c0_3, %c0_4], %4 {strides = array<i32>} : memref<4x1024xf32, #tpu.memory_space<vmem>>, vector<4x1024xf32>,
    return
  }
  func.func @transform_0(%arg0: i32) -> (i32, i32) {
    %c0_i32 = arith.constant 0 : i32
    %c0_i32_0 = arith.constant 0 : i32
    %c0_i32_1 = arith.constant 0 : i32
    return %c0_i32, %c0_i32_0 : i32, i32
  }
  func.func @transform_1(%arg0: i32) -> (i32, i32) {
    %c0_i32 = arith.constant 0 : i32
    %c0_i32_0 = arith.constant 0 : i32
    return %c0_i32, %arg0 : i32, i32
  }
  func.func @transform_2(%arg0: i32) -> (i32, i32) {
    %c0_i32 = arith.constant 0 : i32
    %c0_i32_0 = arith.constant 0 : i32
    return %c0_i32, %arg0 : i32, i32
  }
}

module attributes {stable_mosaic.version = 11 : i64} {
  func.func @kernel(%arg0: i32, %arg1: memref<8x64xbf16, #tpu.memory_space<vmem>>, %arg2: memref<64x512xbf16, #tpu.memory_space<vmem>>, %arg3: memref<8x512xf32, #tpu.memory_space<vmem>>) attributes {dimension_semantics = [#tpu.dimension_semantics<parallel>], iteration_bounds = array<i64: 4>, scalar_prefetch = 0 : i64, scratch_operands = 0 : i64, tpu.core_type = #tpu.core_type<tc>, window_params = [{pipeline_mode = #tpu.pipeline_mode<synchronous>, transform_indices = @transform_0, window_bounds = array<i64: 8, 64>}, {transform_indices = @transform_1, window_bounds = array<i64: 64, 512>}, {transform_indices = @transform_2, window_bounds = array<i64: 8, 512>}]} {
    %c0 = arith.constant 0 : index
    %c0_0 = arith.constant 0 : index
    %0 = vector.load %arg2[%c0, %c0_0] : memref<64x512xbf16, #tpu.memory_space<vmem>>, vector<64x512xbf16>
    %1 = arith.extf %0 : vector<64x512xbf16> to vector<64x512xf32>
    %cst = arith.constant 0.000000e+00 : f32
    %2 = vector.broadcast %cst : f32 to vector<64x512xf32>
    %3 = arith.cmpf ogt, %1, %2 : vector<64x512xf32>
    %cst_1 = arith.constant 2.000000e-01 : f32
    %4 = vector.broadcast %cst_1 : f32 to vector<64x512xf32>
    %5 = arith.mulf %4, %1 : vector<64x512xf32>
    %6 = arith.select %3, %1, %5 : vector<64x512xi1>, vector<64x512xf32>
    %c0_2 = arith.constant 0 : index
    %c0_3 = arith.constant 0 : index
    %7 = vector.load %arg1[%c0_2, %c0_3] : memref<8x64xbf16, #tpu.memory_space<vmem>>, vector<8x64xbf16>
    %8 = arith.truncf %6 : vector<64x512xf32> to vector<64x512xbf16>
    %cst_4 = arith.constant dense<0.000000e+00> : vector<8x512xf32>
    %9 = tpu.matmul %7, %8, %cst_4 {dimension_numbers = #tpu.dot_dimension_numbers<[1], [0], [0], [1], [0, 0, 1, 1], [], []>} : vector<8x64xbf16>, vector<64x512xbf16>, vector<8x512xf32> -> vector<8x512xf32>
    %c0_5 = arith.constant 0 : index
    %c0_6 = arith.constant 0 : index
    %10 = vector.load %arg3[%c0_5, %c0_6] : memref<8x512xf32, #tpu.memory_space<vmem>>, vector<8x512xf32>
    tpu.vector_store %arg3[%c0_5, %c0_6], %9 {strides = array<i32>} : memref<8x512xf32, #tpu.memory_space<vmem>>, vector<8x512xf32>,
    return
  }
  func.func @transform_0(%arg0: i32) -> (i32, i32) {
    %c0_i32 = arith.constant 0 : i32
    %c0_i32_0 = arith.constant 0 : i32
    %c0_i32_1 = arith.constant 0 : i32
    return %c0_i32, %c0_i32_0 : i32, i32
  }
  func.func @transform_1(%arg0: i32) -> (i32, i32) {
    %c0_i32 = arith.constant 0 : i32
    %c0_i32_0 = arith.constant 0 : i32
    return %c0_i32, %arg0 : i32, i32
  }
  func.func @transform_2(%arg0: i32) -> (i32, i32) {
    %c0_i32 = arith.constant 0 : i32
    %c0_i32_0 = arith.constant 0 : i32
    return %c0_i32, %arg0 : i32, i32
  }
}

module attributes {stable_mosaic.version = 11 : i64} {
  func.func @kernel(%arg0: i32, %arg1: memref<8x144xbf16, #tpu.memory_space<vmem>>, %arg2: memref<144x512xbf16, #tpu.memory_space<vmem>>, %arg3: memref<8x512xf32, #tpu.memory_space<vmem>>) attributes {dimension_semantics = [#tpu.dimension_semantics<parallel>], iteration_bounds = array<i64: 4>, scalar_prefetch = 0 : i64, scratch_operands = 0 : i64, tpu.core_type = #tpu.core_type<tc>, window_params = [{pipeline_mode = #tpu.pipeline_mode<synchronous>, transform_indices = @transform_0, window_bounds = array<i64: 8, 144>}, {transform_indices = @transform_1, window_bounds = array<i64: 144, 512>}, {transform_indices = @transform_2, window_bounds = array<i64: 8, 512>}]} {
    %c0 = arith.constant 0 : index
    %c0_0 = arith.constant 0 : index
    %0 = vector.load %arg2[%c0, %c0_0] : memref<144x512xbf16, #tpu.memory_space<vmem>>, vector<144x512xbf16>
    %1 = arith.extf %0 : vector<144x512xbf16> to vector<144x512xf32>
    %c0_1 = arith.constant 0 : index
    %c0_2 = arith.constant 0 : index
    %2 = vector.load %arg1[%c0_1, %c0_2] : memref<8x144xbf16, #tpu.memory_space<vmem>>, vector<8x144xbf16>
    %3 = arith.truncf %1 : vector<144x512xf32> to vector<144x512xbf16>
    %cst = arith.constant dense<0.000000e+00> : vector<8x512xf32>
    %4 = tpu.matmul %2, %3, %cst {dimension_numbers = #tpu.dot_dimension_numbers<[1], [0], [0], [1], [0, 0, 1, 1], [], []>} : vector<8x144xbf16>, vector<144x512xbf16>, vector<8x512xf32> -> vector<8x512xf32>
    %c0_3 = arith.constant 0 : index
    %c0_4 = arith.constant 0 : index
    %5 = vector.load %arg3[%c0_3, %c0_4] : memref<8x512xf32, #tpu.memory_space<vmem>>, vector<8x512xf32>
    tpu.vector_store %arg3[%c0_3, %c0_4], %4 {strides = array<i32>} : memref<8x512xf32, #tpu.memory_space<vmem>>, vector<8x512xf32>,
    return
  }
  func.func @transform_0(%arg0: i32) -> (i32, i32) {
    %c0_i32 = arith.constant 0 : i32
    %c0_i32_0 = arith.constant 0 : i32
    %c0_i32_1 = arith.constant 0 : i32
    return %c0_i32, %c0_i32_0 : i32, i32
  }
  func.func @transform_1(%arg0: i32) -> (i32, i32) {
    %c0_i32 = arith.constant 0 : i32
    %c0_i32_0 = arith.constant 0 : i32
    return %c0_i32, %arg0 : i32, i32
  }
  func.func @transform_2(%arg0: i32) -> (i32, i32) {
    %c0_i32 = arith.constant 0 : i32
    %c0_i32_0 = arith.constant 0 : i32
    return %c0_i32, %arg0 : i32, i32
  }
}

module attributes {stable_mosaic.version = 11 : i64} {
  func.func @kernel(%arg0: i32, %arg1: memref<4x144xbf16, #tpu.memory_space<vmem>>, %arg2: memref<144x1024xbf16, #tpu.memory_space<vmem>>, %arg3: memref<4x1024xf32, #tpu.memory_space<vmem>>) attributes {dimension_semantics = [#tpu.dimension_semantics<parallel>], iteration_bounds = array<i64: 8>, scalar_prefetch = 0 : i64, scratch_operands = 0 : i64, tpu.core_type = #tpu.core_type<tc>, window_params = [{pipeline_mode = #tpu.pipeline_mode<synchronous>, transform_indices = @transform_0, window_bounds = array<i64: 4, 144>}, {transform_indices = @transform_1, window_bounds = array<i64: 144, 1024>}, {transform_indices = @transform_2, window_bounds = array<i64: 4, 1024>}]} {
    %c0 = arith.constant 0 : index
    %c0_0 = arith.constant 0 : index
    %0 = vector.load %arg2[%c0, %c0_0] : memref<144x1024xbf16, #tpu.memory_space<vmem>>, vector<144x1024xbf16>
    %1 = arith.extf %0 : vector<144x1024xbf16> to vector<144x1024xf32>
    %c0_1 = arith.constant 0 : index
    %c0_2 = arith.constant 0 : index
    %2 = vector.load %arg1[%c0_1, %c0_2] : memref<4x144xbf16, #tpu.memory_space<vmem>>, vector<4x144xbf16>
    %3 = arith.truncf %1 : vector<144x1024xf32> to vector<144x1024xbf16>
    %cst = arith.constant dense<0.000000e+00> : vector<4x1024xf32>
    %4 = tpu.matmul %2, %3, %cst {dimension_numbers = #tpu.dot_dimension_numbers<[1], [0], [0], [1], [0, 0, 1, 1], [], []>} : vector<4x144xbf16>, vector<144x1024xbf16>, vector<4x1024xf32> -> vector<4x1024xf32>
    %c0_3 = arith.constant 0 : index
    %c0_4 = arith.constant 0 : index
    %5 = vector.load %arg3[%c0_3, %c0_4] : memref<4x1024xf32, #tpu.memory_space<vmem>>, vector<4x1024xf32>
    tpu.vector_store %arg3[%c0_3, %c0_4], %4 {strides = array<i32>} : memref<4x1024xf32, #tpu.memory_space<vmem>>, vector<4x1024xf32>,
    return
  }
  func.func @transform_0(%arg0: i32) -> (i32, i32) {
    %c0_i32 = arith.constant 0 : i32
    %c0_i32_0 = arith.constant 0 : i32
    %c0_i32_1 = arith.constant 0 : i32
    return %c0_i32, %c0_i32_0 : i32, i32
  }
  func.func @transform_1(%arg0: i32) -> (i32, i32) {
    %c0_i32 = arith.constant 0 : i32
    %c0_i32_0 = arith.constant 0 : i32
    return %c0_i32, %arg0 : i32, i32
  }
  func.func @transform_2(%arg0: i32) -> (i32, i32) {
    %c0_i32 = arith.constant 0 : i32
    %c0_i32_0 = arith.constant 0 : i32
    return %c0_i32, %arg0 : i32, i32
  }
}

module attributes {stable_mosaic.version = 11 : i64} {
  func.func @kernel(%arg0: i32, %arg1: memref<12x72xbf16, #tpu.memory_space<vmem>>, %arg2: memref<72x1024xbf16, #tpu.memory_space<vmem>>, %arg3: memref<12x1024xf32, #tpu.memory_space<vmem>>) attributes {dimension_semantics = [#tpu.dimension_semantics<parallel>], iteration_bounds = array<i64: 8>, scalar_prefetch = 0 : i64, scratch_operands = 0 : i64, tpu.core_type = #tpu.core_type<tc>, window_params = [{pipeline_mode = #tpu.pipeline_mode<synchronous>, transform_indices = @transform_0, window_bounds = array<i64: 12, 72>}, {transform_indices = @transform_1, window_bounds = array<i64: 72, 1024>}, {transform_indices = @transform_2, window_bounds = array<i64: 12, 1024>}]} {
    %c0 = arith.constant 0 : index
    %c0_0 = arith.constant 0 : index
    %0 = vector.load %arg2[%c0, %c0_0] : memref<72x1024xbf16, #tpu.memory_space<vmem>>, vector<72x1024xbf16>
    %1 = arith.extf %0 : vector<72x1024xbf16> to vector<72x1024xf32>
    %cst = arith.constant 0.000000e+00 : f32
    %2 = vector.broadcast %cst : f32 to vector<72x1024xf32>
    %3 = arith.maximumf %1, %2 : vector<72x1024xf32>
    %c0_1 = arith.constant 0 : index
    %c0_2 = arith.constant 0 : index
    %4 = vector.load %arg1[%c0_1, %c0_2] : memref<12x72xbf16, #tpu.memory_space<vmem>>, vector<12x72xbf16>
    %5 = arith.truncf %3 : vector<72x1024xf32> to vector<72x1024xbf16>
    %cst_3 = arith.constant dense<0.000000e+00> : vector<12x1024xf32>
    %6 = tpu.matmul %4, %5, %cst_3 {dimension_numbers = #tpu.dot_dimension_numbers<[1], [0], [0], [1], [0, 0, 1, 1], [], []>} : vector<12x72xbf16>, vector<72x1024xbf16>, vector<12x1024xf32> -> vector<12x1024xf32>
    %c0_4 = arith.constant 0 : index
    %c0_5 = arith.constant 0 : index
    %7 = vector.load %arg3[%c0_4, %c0_5] : memref<12x1024xf32, #tpu.memory_space<vmem>>, vector<12x1024xf32>
    tpu.vector_store %arg3[%c0_4, %c0_5], %6 {strides = array<i32>} : memref<12x1024xf32, #tpu.memory_space<vmem>>, vector<12x1024xf32>,
    return
  }
  func.func @transform_0(%arg0: i32) -> (i32, i32) {
    %c0_i32 = arith.constant 0 : i32
    %c0_i32_0 = arith.constant 0 : i32
    %c0_i32_1 = arith.constant 0 : i32
    return %c0_i32, %c0_i32_0 : i32, i32
  }
  func.func @transform_1(%arg0: i32) -> (i32, i32) {
    %c0_i32 = arith.constant 0 : i32
    %c0_i32_0 = arith.constant 0 : i32
    return %c0_i32, %arg0 : i32, i32
  }
  func.func @transform_2(%arg0: i32) -> (i32, i32) {
    %c0_i32 = arith.constant 0 : i32
    %c0_i32_0 = arith.constant 0 : i32
    return %c0_i32, %arg0 : i32, i32
  }
}

</mosaic_0001>

<bundles_post_ra>
// kernel: tile.8
= control target key start
LH: loop header
LB: loop body
LE: loop exit
PB: predicated region body
PF: predicated region fallthrough
CT: control target
= control target key end

     0   :  { %2 = vsyncpa [#allocation1], 0  ;;  %s44_s6 = smov [#allocation0]   ;;  %s70_s0 = inlined_call_operand.hbm [shape: f32[3], index: 0, kind: input, shape index: {}]   ;;  %s71_s1 = inlined_call_operand.vmem [shape: f32[4,3], index: 1, kind: output, shape index: {}]  }
   0x1   :  { %s9_s7 = sshll.u32 %s44_s6, 4  ;;  %s20_s10 = scalar_lea.hbm %s70_s0, 16  ;;  %s10_s7 = int_to_ptr.vmem [resolvable:$true] %s9_s7 }
   0x2   :  { %p21_p0 = scmp.ne.s32.totalorder %s70_s0, %s20_s10  ;;  %p24_p1 = scmp.lt.u32.totalorder %s20_s10, %s70_s0 }
   0x4   :  { %p26_p2 = pnand %p24_p1, %p21_p0 }
   0x6   :  { %29 = shalt.err (!%p26_p2)
}
   0x7   :  { %s30_s15 = scalar_lea.vmem %s10_s7, 16  ;;  %s34_s16 = scalar_lea.vmem %s10_s7, 32 }
   0x8   :  { %p31_p3 = scmp.ne.s32.totalorder %s10_s7, %s30_s15  ;;  %p35_p4 = scmp.lt.s32.totalorder %s10_s7, %s10_s7 }
   0x9   :  { %p36_p5 = scmp.lt.s32.totalorder %s34_s16, %s30_s15 }
   0xb   :  { %p37_p6 = por %p36_p5, %p35_p4 }
   0xd   :  { %p38_p7 = pnand %p37_p6, %p31_p3 }
   0xf   :  { %41 = shalt.err (!%p38_p7)
}
  0x10   :  { %12 = dma.hbm_to_vmem [thread:$0]  %s70_s0, 16, %s10_s7, [#allocation1]  }
  0x11   :  { %42 = dma.done.wait [#allocation1], 16  }
  0x12   :  { %43 = vsyncadd [#allocation1], 4294967280  ;;  %v16_v0 = vld [vmem:[#allocation0] ss:$0 sm:$0xff] }
  0x13   :  { %17 = vst [vmem:[%s71_s1] sm:$0xf] %v16_v0 }
  0x14   :  { %18 = vsyncpa [#allocation1], 1 }

// kernel: turbnetg_forward.5
= control target key start
LH: loop header
LB: loop body
LE: loop exit
PB: predicated region body
PF: predicated region fallthrough
CT: control target
= control target key end

     0   :  { %s715_s9 = smov 0   ;;  %s717_s10 = smov 0   ;;  %s856_s0 = inlined_call_operand.vmem [shape: bf16[4,48], index: 0, kind: input, shape index: {}]   ;;  %s857_s1 = inlined_call_operand.vmem [shape: bf16[48,8192], index: 1, kind: input, shape index: {}]   ;;  %s858_s2 = inlined_call_operand.vmem [shape: f32[4,8192], index: 2, kind: output, shape index: {}]  }
   0x1   :  { %s719_s11 = smov 0  }
   0x2 LB: > { %s608_s12 = sadd.s32 4294967295, %s697_s11   ;;  %s732_s13 = sadd.s32 1, %s697_s11   ;;  %s697_s11 = sphi %s719_s11, %s861_s11   ;;  %s693_s10 = sphi %s717_s10, %s860_s10   ;;  %s689_s9 = sphi %s715_s9, %s859_s9  }
   0x3   : > { %s37_s14 = ssub.s32 %s697_s11, %s732_s13  ;;  %s40_s15 = sadd.s32 1, %s693_s10 }
   0x4   : > { %p38_p0 = scmp.eq.s32.totalorder %s37_s14, 0  ;;  %p47_p1 = scmp.ne.s32.totalorder %s693_s10, %s689_s9 }
   0x5   : > { %p48_p2 = scmp.eq.s32.totalorder %s697_s11, 0  ;;  %p611_p4 = scmp.ge.s32.totalorder %s697_s11, 8 }
   0x6   : > { %s741_s16 = scalar_select %p38_p0, %s693_s10, %s40_s15  }
   0x7   : > { %p49_p3 = por %p48_p2, %p47_p1  ;;  %102 = sbr.rel (%p611_p4) target bundleno = 31 (0x1f), region = 20 }
   0xe   : > { %105 = sbr.rel (!%p49_p3) target bundleno = 31 (0x1f), region = 24  ;;  %s107_s17 = sand.u32 (%p49_p3), 1, %s693_s10  }
   0xf   : > { %s647_s18 = sshll.u32 (%p49_p3), %s697_s11, 5  ;;  %s648_s19 = smul.u32 (%p49_p3), 192, %s107_s17 }
  0x10   : > { %s749_s22 = scalar_lea.vmem (%p49_p3), %s857_s1, %s647_s18 }
  0x11   : > { %v125_v0 = vld [vmem:[%s749_s22] sm:$0xff] (%p49_p3)  ;;  %v127_v1 = vld [vmem:[%s749_s22 + $0x8] sm:$0xff] (%p49_p3)  ;;  %v129_v2 = vld [vmem:[%s749_s22 + $0x10] sm:$0xff] (%p49_p3)  ;;  %s757_s23 = scalar_lea.vmem (%p49_p3), [#allocation2], %s648_s19 }
  0x12   : > { %v131_v3 = vld [vmem:[%s749_s22 + $0x18] sm:$0xff] (%p49_p3)  ;;  %v133_v4 = vld [vmem:[%s749_s22 + $0x100] sm:$0xff] (%p49_p3)  ;;  %v135_v5 = vld [vmem:[%s749_s22 + $0x108] sm:$0xff] (%p49_p3)  ;;  %126 = vst [vmem:[%s757_s23] sm:$0xff] (%p49_p3), %v125_v0 }
  0x13   : > { %128 = vst [vmem:[%s757_s23 + $0x8] sm:$0xff] (%p49_p3), %v127_v1  ;;  %130 = vst [vmem:[%s757_s23 + $0x10] sm:$0xff] (%p49_p3), %v129_v2  ;;  %v137_v6 = vld [vmem:[%s749_s22 + $0x110] sm:$0xff] (%p49_p3)  ;;  %v139_v7 = vld [vmem:[%s749_s22 + $0x118] sm:$0xff] (%p49_p3) }
  0x14   : > { %132 = vst [vmem:[%s757_s23 + $0x18] sm:$0xff] (%p49_p3), %v131_v3  ;;  %134 = vst [vmem:[%s757_s23 + $0x20] sm:$0xff] (%p49_p3), %v133_v4  ;;  %v141_v8 = vld [vmem:[%s749_s22 + $0x200] sm:$0xff] (%p49_p3)  ;;  %v143_v9 = vld [vmem:[%s749_s22 + $0x208] sm:$0xff] (%p49_p3) }
  0x15   : > { %136 = vst [vmem:[%s757_s23 + $0x28] sm:$0xff] %v135_v5  ;;  %138 = vst [vmem:[%s757_s23 + $0x30] sm:$0xff] %v137_v6  ;;  %v145_v10 = vld [vmem:[%s749_s22 + $0x210] sm:$0xff]  ;;  %v147_v11 = vld [vmem:[%s749_s22 + $0x218] sm:$0xff] }
  0x16   : > { %140 = vst [vmem:[%s757_s23 + $0x38] sm:$0xff] %v139_v7  ;;  %142 = vst [vmem:[%s757_s23 + $0x40] sm:$0xff] %v141_v8  ;;  %v149_v12 = vld [vmem:[%s749_s22 + $0x300] sm:$0xff]  ;;  %v151_v13 = vld [vmem:[%s749_s22 + $0x308] sm:$0xff] }
  0x17   : > { %144 = vst [vmem:[%s757_s23 + $0x48] sm:$0xff] %v143_v9  ;;  %146 = vst [vmem:[%s757_s23 + $0x50] sm:$0xff] %v145_v10  ;;  %v153_v14 = vld [vmem:[%s749_s22 + $0x310] sm:$0xff]  ;;  %v155_v15 = vld [vmem:[%s749_s22 + $0x318] sm:$0xff] }
  0x18   : > { %148 = vst [vmem:[%s757_s23 + $0x58] sm:$0xff] %v147_v11  ;;  %150 = vst [vmem:[%s757_s23 + $0x60] sm:$0xff] %v149_v12  ;;  %v157_v16 = vld [vmem:[%s749_s22 + $0x400] sm:$0xff]  ;;  %v159_v17 = vld [vmem:[%s749_s22 + $0x408] sm:$0xff] }
  0x19   : > { %152 = vst [vmem:[%s757_s23 + $0x68] sm:$0xff] %v151_v13  ;;  %154 = vst [vmem:[%s757_s23 + $0x70] sm:$0xff] %v153_v14  ;;  %v161_v18 = vld [vmem:[%s749_s22 + $0x410] sm:$0xff]  ;;  %v163_v19 = vld [vmem:[%s749_s22 + $0x418] sm:$0xff] }
  0x1a   : > { %156 = vst [vmem:[%s757_s23 + $0x78] sm:$0xff] %v155_v15  ;;  %158 = vst [vmem:[%s757_s23 + $0x80] sm:$0xff] %v157_v16  ;;  %v165_v20 = vld [vmem:[%s749_s22 + $0x500] sm:$0xff]  ;;  %v167_v21 = vld [vmem:[%s749_s22 + $0x508] sm:$0xff] }
  0x1b   : > { %160 = vst [vmem:[%s757_s23 + $0x88] sm:$0xff] %v159_v17  ;;  %162 = vst [vmem:[%s757_s23 + $0x90] sm:$0xff] %v161_v18  ;;  %v169_v22 = vld [vmem:[%s749_s22 + $0x510] sm:$0xff]  ;;  %v171_v23 = vld [vmem:[%s749_s22 + $0x518] sm:$0xff] }
  0x1c   : > { %164 = vst [vmem:[%s757_s23 + $0x98] sm:$0xff] %v163_v19  ;;  %166 = vst [vmem:[%s757_s23 + $0xa0] sm:$0xff] %v165_v20 }
  0x1d   : > { %168 = vst [vmem:[%s757_s23 + $0xa8] sm:$0xff] %v167_v21  ;;  %170 = vst [vmem:[%s757_s23 + $0xb0] sm:$0xff] %v169_v22 }
  0x1e   : > { %172 = vst [vmem:[%s757_s23 + $0xb8] sm:$0xff] %v171_v23 }
  0x1f PF: > { %p614_p5 = scmp.ge.s32.totalorder %s697_s11, 1  ;;  %p177_p6 = scmp.lt.s32.totalorder %s697_s11, 9 }
  0x21   : > { %p178_p7 = pnand %p614_p5, %p177_p6 }
  0x22   : > { %s184_s24 = sand.u32 (!%p178_p7), 1, %s689_s9   ;;  %v699_v24 = vmov (!%p178_p7), 0   ;;  %v237_v59 = vld [vmem:[%s856_s0] sm:$0x3] (!%p178_p7)  ;;  %vm358_vm0 = vcmask (!%p178_p7), 392192   ;;  %s615_s29 = sshll.u32 (!%p178_p7), %s608_s12, 3 }
  0x23   : > { %181 = sbr.rel (%p178_p7) target bundleno = 283 (0x11b), region = 47  ;;  %394 = vmatprep.mubr.bf16.mxu0 (!%p178_p7), %v699_v24  ;;  %435 = vmatprep.mubr.bf16.mxu1 (!%p178_p7), %v699_v24  ;;  %p207_p8 = scmp.lt.s32.totalorder (!%p178_p7), %s615_s29, 63 }
  0x24   : > { %s649_s25 = smul.u32 (!%p178_p7), 192, %s184_s24 }
  0x26   : > { %s806_s26 = scalar_lea.vmem (!%p178_p7), [#allocation2], %s649_s25 }
  0x27   : > { %v213_v25 = vld [vmem:[%s806_s26] sm:$0xff] (!%p178_p7)  ;;  %v214_v27 = vld [vmem:[%s806_s26 + $0x8] sm:$0xff] (!%p178_p7)  ;;  %v215_v47 = vld [vmem:[%s806_s26 + $0x10] sm:$0xff] (!%p178_p7) }
  0x28   : > { %v217_v26 = vld [vmem:[%s806_s26 + $0x20] sm:$0xff] (!%p178_p7)  ;;  %v218_v29 = vld [vmem:[%s806_s26 + $0x28] sm:$0xff] (!%p178_p7)  ;;  %v219_v48 = vld [vmem:[%s806_s26 + $0x30] sm:$0xff] (!%p178_p7) }
  0x29   : > { %v618_v28 = vcombine.high (!%p178_p7), %v213_v25, %v217_v26  ;;  %v617_v30 = vcombine.low (!%p178_p7), %v213_v25, %v217_v26  ;;  %v221_v31 = vld [vmem:[%s806_s26 + $0x40] sm:$0xff] (!%p178_p7)  ;;  %v620_v33 = vcombine.high (!%p178_p7), %v214_v27, %v218_v29  ;;  %v619_v34 = vcombine.low (!%p178_p7), %v214_v27, %v218_v29  ;;  %v222_v36 = vld [vmem:[%s806_s26 + $0x48] sm:$0xff] (!%p178_p7)  ;;  %v216_v49 = vld [vmem:[%s806_s26 + $0x18] sm:$0xff] (!%p178_p7) }
  0x2a   : > { %v225_v32 = vld [vmem:[%s806_s26 + $0x60] sm:$0xff]  ;;  %v226_v37 = vld [vmem:[%s806_s26 + $0x68] sm:$0xff]  ;;  %v220_v50 = vld [vmem:[%s806_s26 + $0x38] sm:$0xff]  ;;  %v622_v53 = vcombine.high %v215_v47, %v219_v48  ;;  %v621_v60 = vcombine.low %v215_v47, %v219_v48  ;;  %s863_s29 = smov (!%p207_p8, %s615_s29), 63 }
  0x2b   : > { %v626_v35 = vcombine.high %v221_v31, %v225_v32  ;;  %v229_v38 = vld [vmem:[%s806_s26 + $0x80] sm:$0xff]  ;;  %362 = vmatprep.subr.bf16.mxu0 %v618_v28  ;;  %v628_v39 = vcombine.high %v222_v36, %v226_v37  ;;  %v230_v41 = vld [vmem:[%s806_s26 + $0x88] sm:$0xff]  ;;  %403 = vmatprep.subr.bf16.mxu1 %v620_v33  ;;  %v625_v43 = vcombine.low %v221_v31, %v225_v32  ;;  %v223_v55 = vld [vmem:[%s806_s26 + $0x50] sm:$0xff]  ;;  %s616_s30 = sshll.u32 %s863_s29, 2 }
  0x2c   : > { %v233_v40 = vld [vmem:[%s806_s26 + $0xa0] sm:$0xff]  ;;  %v234_v42 = vld [vmem:[%s806_s26 + $0xa8] sm:$0xff]  ;;  %363 = vmatpush1.bf16.msra.mxu0 %v617_v30  ;;  %404 = vmatpush1.bf16.msra.mxu1 %v619_v34  ;;  %v627_v44 = vcombine.low %v222_v36, %v226_v37  ;;  %v624_v54 = vcombine.high %v216_v49, %v220_v50  ;;  %v227_v56 = vld [vmem:[%s806_s26 + $0x70] sm:$0xff]  ;;  %v623_v61 = vcombine.low %v216_v49, %v220_v50  ;;  %s210_s5 = scalar_lea.vmem %s858_s2, %s616_s30 }
  0x2d   : > { %364 = vmatprep.subr.bf16.mxu0 %v626_v35  ;;  %v634_v45 = vcombine.high %v229_v38, %v233_v40  ;;  %405 = vmatprep.subr.bf16.mxu1 %v628_v39  ;;  %v636_v46 = vcombine.high %v230_v41, %v234_v42  ;;  %v633_v51 = vcombine.low %v229_v38, %v233_v40  ;;  %v224_v57 = vld [vmem:[%s806_s26 + $0x58] sm:$0xff]  ;;  %v231_v0 = vld [vmem:[%s806_s26 + $0x90] sm:$0xff] }
  0x2e   : > { %v635_v52 = vcombine.low %v230_v41, %v234_v42  ;;  %v228_v58 = vld [vmem:[%s806_s26 + $0x78] sm:$0xff]  ;;  %v630_v62 = vcombine.high %v223_v55, %v227_v56  ;;  %v235_v1 = vld [vmem:[%s806_s26 + $0xb0] sm:$0xff]  ;;  %v629_v4 = vcombine.low %v223_v55, %v227_v56 }
  0x2f   : > { %v632_v63 = vcombine.high %v224_v57, %v228_v58  ;;  %v232_v2 = vld [vmem:[%s806_s26 + $0x98] sm:$0xff]  ;;  %v631_v5 = vcombine.low %v224_v57, %v228_v58  ;;  %v638_v6 = vcombine.high %v231_v0, %v235_v1  ;;  %v637_v8 = vcombine.low %v231_v0, %v235_v1 }
  0x30   : > { %365 = vmatpush1.bf16.msra.mxu0 %v625_v43  ;;  %406 = vmatpush1.bf16.msra.mxu1 %v627_v44  ;;  %v236_v3 = vld [vmem:[%s806_s26 + $0xb8] sm:$0xff] }
  0x31   : > { %366 = vmatprep.subr.bf16.mxu0 %v634_v45  ;;  %407 = vmatprep.subr.bf16.mxu1 %v636_v46  ;;  %v640_v7 = vcombine.high %v232_v2, %v236_v3  ;;  %v639_v9 = vcombine.low %v232_v2, %v236_v3 }
  0x34   : > { %367 = vmatpush1.bf16.msra.mxu0 %v633_v51  ;;  %408 = vmatpush1.bf16.msra.mxu1 %v635_v52 }
  0x35   : > { %444 = vmatprep.subr.bf16.mxu0 %v622_v53  ;;  %485 = vmatprep.subr.bf16.mxu1 %v624_v54 }
  0x37   : > { %641 = vmatmul.mubr.msk.bf16.vlgmr.msra.gmra.mrb[0].mxu0 %vm358_vm0, %v237_v59  ;;  %642 = vmatmul.mubr.msk.bf16.vlgmr.msra.gmra.mrb[0].mxu1 %vm358_vm0, %v237_v59 }
  0x38   : > { %445 = vmatpush1.bf16.msra.mxu0 %v621_v60  ;;  %486 = vmatpush1.bf16.msra.mxu1 %v623_v61 }
  0x39   : > { %446 = vmatprep.subr.bf16.mxu0 %v630_v62  ;;  %487 = vmatprep.subr.bf16.mxu1 %v632_v63 }
  0x3a   : > { %476 = vmatprep.mubr.bf16.mxu0 %v699_v24  ;;  %517 = vmatprep.mubr.bf16.mxu1 %v699_v24 }
  0x3c   : > { %447 = vmatpush1.bf16.msra.mxu0 %v629_v4  ;;  %488 = vmatpush1.bf16.msra.mxu1 %v631_v5 }
  0x3d   : > { %448 = vmatprep.subr.bf16.mxu0 %v638_v6  ;;  %489 = vmatprep.subr.bf16.mxu1 %v640_v7 }
  0x40   : > { %449 = vmatpush1.bf16.msra.mxu0 %v637_v8  ;;  %490 = vmatpush1.bf16.msra.mxu1 %v639_v9 }
  0x43   : > { %643 = vmatmul.mubr.msk.bf16.vlgmr.msra.gmra.mrb[4].mxu0 %vm358_vm0, %v237_v59  ;;  %644 = vmatmul.mubr.msk.bf16.vlgmr.msra.gmra.mrb[4].mxu1 %vm358_vm0, %v237_v59 }
 0x10a   : > { %v396_v10 = vpop.f32.mrb[0].mxu0  ;;  %v437_v11 = vpop.f32.mrb[0].mxu1 }
 0x10b   : > { %v398_v12 = vpop.f32.mrb[1].mxu0  ;;  %v439_v14 = vpop.f32.mrb[1].mxu1 }
 0x10c   : > { %v534_v13 = vcombine.low %v396_v10, %v398_v12  ;;  %v400_v15 = vpop.f32.mrb[2].mxu0  ;;  %v535_v16 = vcombine.low %v437_v11, %v439_v14  ;;  %v441_v17 = vpop.f32.mrb[2].mxu1 }
 0x10d   : > { %v401_v18 = vpop.f32.mrb[3].mxu0  ;;  %v442_v19 = vpop.f32.mrb[3].mxu1 }
 0x10e   : > { %542 = vst [vmem:[%s210_s5] sm:$0xff] %v534_v13  ;;  %543 = vst [vmem:[%s210_s5 + $0x8] sm:$0xff] %v535_v16 }
 0x116   : > { %v478_v20 = vpop.f32.mrb[4].mxu0  ;;  %v519_v21 = vpop.f32.mrb[4].mxu1 }
 0x117   : > { %v480_v22 = vpop.f32.mrb[5].mxu0  ;;  %v521_v24 = vpop.f32.mrb[5].mxu1 }
 0x118   : > { %v536_v23 = vcombine.low %v478_v20, %v480_v22  ;;  %v482_v25 = vpop.f32.mrb[6].mxu0  ;;  %v537_v26 = vcombine.low %v519_v21, %v521_v24  ;;  %v523_v27 = vpop.f32.mrb[6].mxu1 }
 0x119   : > { %v483_v28 = vpop.f32.mrb[7].mxu0  ;;  %v524_v29 = vpop.f32.mrb[7].mxu1 }
 0x11a   : > { %544 = vst [vmem:[%s210_s5 + $0x10] sm:$0xff] %v536_v23  ;;  %545 = vst [vmem:[%s210_s5 + $0x18] sm:$0xff] %v537_v26 }
 0x11b PF: > { %p9_p9 = scmp.ge.s32.totalorder %s732_s13, 10   ;;  %s859_s9 = smov %s693_s10 }
 0x11c   : > { %s860_s10 = smov %s741_s16  ;;  %s861_s11 = smov %s732_s13 }
 0x11d   :  { %11 = sbr.rel (!%p9_p9) target bundleno = 2 (0x2), region = 86 }

// kernel: turbnetg_forward.6
= control target key start
LH: loop header
LB: loop body
LE: loop exit
PB: predicated region body
PF: predicated region fallthrough
CT: control target
= control target key end

     0   :  { %s591_s9 = smov 0   ;;  %s593_s10 = smov 0   ;;  %s683_s0 = inlined_call_operand.vmem [shape: bf16[8,64], index: 0, kind: input, shape index: {}]   ;;  %s684_s1 = inlined_call_operand.vmem [shape: bf16[64,2048], index: 1, kind: input, shape index: {}]   ;;  %s685_s2 = inlined_call_operand.vmem [shape: f32[8,2048], index: 2, kind: output, shape index: {}]  }
   0x1   :  { %s595_s11 = smov 0  }
   0x2 LB: > { %s510_s12 = sadd.s32 4294967295, %s573_s11   ;;  %s608_s13 = sadd.s32 1, %s573_s11   ;;  %s573_s11 = sphi %s595_s11, %s688_s11   ;;  %s569_s10 = sphi %s593_s10, %s687_s10   ;;  %s565_s9 = sphi %s591_s9, %s686_s9  }
   0x3   : > { %s37_s14 = ssub.s32 %s573_s11, %s608_s13  ;;  %s40_s15 = sadd.s32 1, %s569_s10 }
   0x4   : > { %p38_p0 = scmp.eq.s32.totalorder %s37_s14, 0  ;;  %p47_p1 = scmp.ne.s32.totalorder %s569_s10, %s565_s9 }
   0x5   : > { %p48_p2 = scmp.eq.s32.totalorder %s573_s11, 0  ;;  %p513_p4 = scmp.ge.s32.totalorder %s573_s11, 4 }
   0x6   : > { %s617_s16 = scalar_select %p38_p0, %s569_s10, %s40_s15  }
   0x7   : > { %p49_p3 = por %p48_p2, %p47_p1  ;;  %102 = sbr.rel (%p513_p4) target bundleno = 26 (0x1a), region = 20 }
   0xe   : > { %105 = sbr.rel (!%p49_p3) target bundleno = 26 (0x1a), region = 24  ;;  %s107_s17 = sand.u32 (%p49_p3), 1, %s569_s10  }
   0xf   : > { %s525_s18 = sshll.u32 (%p49_p3), %s573_s11, 4  ;;  %s514_s19 = sshll.u32 (%p49_p3), %s107_s17, 7 }
  0x10   : > { %s625_s22 = scalar_lea.vmem (%p49_p3), %s684_s1, %s525_s18  ;;  %s109_s23 = scalar_lea.vmem (%p49_p3), [#allocation2], %s514_s19 }
  0x11   : > { %v125_v0 = vld [vmem:[%s625_s22] sm:$0xff] (%p49_p3)  ;;  %v127_v1 = vld [vmem:[%s625_s22 + $0x8] sm:$0xff] (%p49_p3) }
  0x12   : > { %v129_v2 = vld [vmem:[%s625_s22 + $0x40] sm:$0xff] (%p49_p3)  ;;  %126 = vst [vmem:[%s109_s23] sm:$0xff] (%p49_p3), %v125_v0  ;;  %128 = vst [vmem:[%s109_s23 + $0x8] sm:$0xff] (%p49_p3), %v127_v1  ;;  %v131_v3 = vld [vmem:[%s625_s22 + $0x48] sm:$0xff] (%p49_p3) }
  0x13   : > { %130 = vst [vmem:[%s109_s23 + $0x10] sm:$0xff] (%p49_p3), %v129_v2  ;;  %v133_v4 = vld [vmem:[%s625_s22 + $0x80] sm:$0xff] (%p49_p3)  ;;  %v135_v5 = vld [vmem:[%s625_s22 + $0x88] sm:$0xff] (%p49_p3)  ;;  %132 = vst [vmem:[%s109_s23 + $0x18] sm:$0xff] (%p49_p3), %v131_v3 }
  0x14   : > { %134 = vst [vmem:[%s109_s23 + $0x20] sm:$0xff] (%p49_p3), %v133_v4  ;;  %136 = vst [vmem:[%s109_s23 + $0x28] sm:$0xff] (%p49_p3), %v135_v5  ;;  %v137_v6 = vld [vmem:[%s625_s22 + $0xc0] sm:$0xff] (%p49_p3)  ;;  %v139_v7 = vld [vmem:[%s625_s22 + $0xc8] sm:$0xff] (%p49_p3) }
  0x15   : > { %v141_v8 = vld [vmem:[%s625_s22 + $0x100] sm:$0xff]  ;;  %138 = vst [vmem:[%s109_s23 + $0x30] sm:$0xff] %v137_v6  ;;  %140 = vst [vmem:[%s109_s23 + $0x38] sm:$0xff] %v139_v7  ;;  %v143_v9 = vld [vmem:[%s625_s22 + $0x108] sm:$0xff] }
  0x16   : > { %142 = vst [vmem:[%s109_s23 + $0x40] sm:$0xff] %v141_v8  ;;  %v145_v10 = vld [vmem:[%s625_s22 + $0x140] sm:$0xff]  ;;  %v147_v11 = vld [vmem:[%s625_s22 + $0x148] sm:$0xff]  ;;  %144 = vst [vmem:[%s109_s23 + $0x48] sm:$0xff] %v143_v9 }
  0x17   : > { %146 = vst [vmem:[%s109_s23 + $0x50] sm:$0xff] %v145_v10  ;;  %148 = vst [vmem:[%s109_s23 + $0x58] sm:$0xff] %v147_v11  ;;  %v149_v12 = vld [vmem:[%s625_s22 + $0x180] sm:$0xff]  ;;  %v151_v13 = vld [vmem:[%s625_s22 + $0x188] sm:$0xff] }
  0x18   : > { %v153_v14 = vld [vmem:[%s625_s22 + $0x1c0] sm:$0xff]  ;;  %150 = vst [vmem:[%s109_s23 + $0x60] sm:$0xff] %v149_v12  ;;  %152 = vst [vmem:[%s109_s23 + $0x68] sm:$0xff] %v151_v13  ;;  %v155_v15 = vld [vmem:[%s625_s22 + $0x1c8] sm:$0xff] }
  0x19   : > { %154 = vst [vmem:[%s109_s23 + $0x70] sm:$0xff] %v153_v14  ;;  %156 = vst [vmem:[%s109_s23 + $0x78] sm:$0xff] %v155_v15 }
  0x1a PF: > { %p517_p5 = scmp.ge.s32.totalorder %s573_s11, 1  ;;  %p161_p6 = scmp.lt.s32.totalorder %s573_s11, 5 }
  0x1c   : > { %p162_p7 = pnand %p517_p5, %p161_p6 }
  0x1d   : > { %s168_s24 = sand.u32 (!%p162_p7), 1, %s565_s9   ;;  %v575_v16 = vmov (!%p162_p7), 0   ;;  %s519_s29 = sshll.u32 (!%p162_p7), %s510_s12, 2 }
  0x1e   : > { %165 = sbr.rel (%p162_p7) target bundleno = 291 (0x123), region = 47  ;;  %s518_s25 = sshll.u32 (!%p162_p7), %s168_s24, 7  ;;  %394 = vmatprep.mubr.bf16.mxu0 (!%p162_p7), %v575_v16  ;;  %435 = vmatprep.mubr.bf16.mxu1 (!%p162_p7), %v575_v16 }
  0x1f   : > { %s646_s26 = scalar_lea.vmem (!%p162_p7), [#allocation2], %s518_s25  ;;  %p191_p8 = scmp.lt.s32.totalorder (!%p162_p7), %s519_s29, 15 }
  0x20   : > { %v197_v17 = vld [vmem:[%s646_s26] sm:$0xff] (!%p162_p7)  ;;  %v199_v18 = vld [vmem:[%s646_s26 + $0x10] sm:$0xff] (!%p162_p7)  ;;  %v198_v19 = vld [vmem:[%s646_s26 + $0x8] sm:$0xff] (!%p162_p7) }
  0x21   : > { %v214_v20 = vunpack.c.h.bf16 (!%p162_p7), %v197_v17  ;;  %v218_v21 = vunpack.c.h.bf16 (!%p162_p7), %v199_v18  ;;  %v200_v22 = vld [vmem:[%s646_s26 + $0x18] sm:$0xff] (!%p162_p7)  ;;  %v216_v23 = vunpack.c.h.bf16 (!%p162_p7), %v198_v19  ;;  %v213_v24 = vunpack.c.l.bf16 (!%p162_p7), %v197_v17  ;;  %v201_v35 = vld [vmem:[%s646_s26 + $0x20] sm:$0xff] (!%p162_p7)  ;;  %v203_v40 = vld [vmem:[%s646_s26 + $0x30] sm:$0xff] (!%p162_p7) }
  0x22   : > { %v220_v25 = vunpack.c.h.bf16 (!%p162_p7), %v200_v22  ;;  %v217_v26 = vunpack.c.l.bf16 (!%p162_p7), %v199_v18  ;;  %v215_v27 = vunpack.c.l.bf16 (!%p162_p7), %v198_v19  ;;  %v219_v28 = vunpack.c.l.bf16 (!%p162_p7), %v200_v22  ;;  %v202_v41 = vld [vmem:[%s646_s26 + $0x28] sm:$0xff] (!%p162_p7)  ;;  %v204_v42 = vld [vmem:[%s646_s26 + $0x38] sm:$0xff] (!%p162_p7)  ;;  %v205_v5 = vld [vmem:[%s646_s26 + $0x40] sm:$0xff] (!%p162_p7) }
  0x23   : > { %vm246_vm0 = vcmp.gt.f32.partialorder (!%p162_p7), %v214_v20, 0.0  ;;  %vm250_vm1 = vcmp.gt.f32.partialorder (!%p162_p7), %v218_v21, 0.0  ;;  %v278_v29 = vmul.f32 (!%p162_p7), 0.2, %v214_v20  ;;  %v282_v30 = vmul.f32 (!%p162_p7), 0.2, %v218_v21 }
  0x24   : > { %vm248_vm2 = vcmp.gt.f32.partialorder (!%p162_p7), %v216_v23, 0.0  ;;  %vm252_vm3 = vcmp.gt.f32.partialorder (!%p162_p7), %v220_v25, 0.0  ;;  %v280_v31 = vmul.f32 (!%p162_p7), 0.2, %v216_v23  ;;  %v284_v32 = vmul.f32 (!%p162_p7), 0.2, %v220_v25 }
  0x25   : > { %v310_v33 = vsel %vm246_vm0, %v214_v20, %v278_v29  ;;  %v314_v34 = vsel %vm250_vm1, %v218_v21, %v282_v30  ;;  %vm245_vm4 = vcmp.gt.f32.partialorder %v213_v24, 0.0  ;;  %vm249_vm5 = vcmp.gt.f32.partialorder %v217_v26, 0.0  ;;  %v207_v6 = vld [vmem:[%s646_s26 + $0x50] sm:$0xff]  ;;  %v206_v7 = vld [vmem:[%s646_s26 + $0x48] sm:$0xff]  ;;  %v208_v16 = vld [vmem:[%s646_s26 + $0x58] sm:$0xff]  ;;  %s690_s29 = smov (!%p191_p8, %s519_s29), 15 }
  0x26   : > { %v343_v36 = vpack.c.bf16 %v314_v34, %v310_v33  ;;  %v312_v37 = vsel %vm248_vm2, %v216_v23, %v280_v31  ;;  %v316_v38 = vsel %vm252_vm3, %v220_v25, %v284_v32  ;;  %v277_v39 = vmul.f32 0.2, %v213_v24  ;;  %v209_v33 = vld [vmem:[%s646_s26 + $0x60] sm:$0xff]  ;;  %s520_s30 = sshll.u32 %s690_s29, 3 }
  0x27   : > { %v345_v43 = vpack.c.bf16 %v316_v38, %v312_v37  ;;  %v281_v44 = vmul.f32 0.2, %v217_v26  ;;  %vm247_vm6 = vcmp.gt.f32.partialorder %v215_v27, 0.0  ;;  %vm251_vm7 = vcmp.gt.f32.partialorder %v219_v28, 0.0  ;;  %v211_v37 = vld [vmem:[%s646_s26 + $0x70] sm:$0xff]  ;;  %s194_s5 = scalar_lea.vmem %s685_s2, %s520_s30 }
  0x28   : > { %362 = vmatprep.subr.bf16.mxu0 %v343_v36  ;;  %v309_v45 = vsel %vm245_vm4, %v213_v24, %v277_v39  ;;  %v279_v46 = vmul.f32 0.2, %v215_v27  ;;  %v283_v47 = vmul.f32 0.2, %v219_v28  ;;  %v222_v48 = vunpack.c.h.bf16 %v201_v35 }
  0x29   : > { %403 = vmatprep.subr.bf16.mxu1 %v345_v43  ;;  %v313_v49 = vsel %vm249_vm5, %v217_v26, %v281_v44  ;;  %v226_v50 = vunpack.c.h.bf16 %v203_v40  ;;  %v224_v51 = vunpack.c.h.bf16 %v202_v41  ;;  %v228_v52 = vunpack.c.h.bf16 %v204_v42 }
  0x2a   : > { %v342_v53 = vpack.c.bf16 %v313_v49, %v309_v45  ;;  %v311_v54 = vsel %vm247_vm6, %v215_v27, %v279_v46  ;;  %v315_v55 = vsel %vm251_vm7, %v219_v28, %v283_v47  ;;  %vm254_vm8 = vcmp.gt.f32.partialorder %v222_v48, 0.0  ;;  %v212_v49 = vld [vmem:[%s646_s26 + $0x78] sm:$0xff] }
  0x2b   : > { %v344_v56 = vpack.c.bf16 %v315_v55, %v311_v54  ;;  %vm258_vm9 = vcmp.gt.f32.partialorder %v226_v50, 0.0  ;;  %v286_v57 = vmul.f32 0.2, %v222_v48  ;;  %v290_v58 = vmul.f32 0.2, %v226_v50 }
  0x2c   : > { %363 = vmatpush1.bf16.msra.mxu0 %v342_v53  ;;  %vm256_vm10 = vcmp.gt.f32.partialorder %v224_v51, 0.0  ;;  %vm260_vm11 = vcmp.gt.f32.partialorder %v228_v52, 0.0  ;;  %v288_v59 = vmul.f32 0.2, %v224_v51  ;;  %v292_v60 = vmul.f32 0.2, %v228_v52 }
  0x2d   : > { %404 = vmatpush1.bf16.msra.mxu1 %v344_v56  ;;  %v318_v61 = vsel %vm254_vm8, %v222_v48, %v286_v57  ;;  %v322_v62 = vsel %vm258_vm9, %v226_v50, %v290_v58  ;;  %v221_v63 = vunpack.c.l.bf16 %v201_v35  ;;  %v225_v0 = vunpack.c.l.bf16 %v203_v40  ;;  %v210_v48 = vld [vmem:[%s646_s26 + $0x68] sm:$0xff] }
  0x2e   : > { %v347_v1 = vpack.c.bf16 %v322_v62, %v318_v61  ;;  %v320_v2 = vsel %vm256_vm10, %v224_v51, %v288_v59  ;;  %v324_v3 = vsel %vm260_vm11, %v228_v52, %v292_v60  ;;  %v223_v4 = vunpack.c.l.bf16 %v202_v41 }
  0x2f   : > { %v349_v8 = vpack.c.bf16 %v324_v3, %v320_v2  ;;  %vm253_vm12 = vcmp.gt.f32.partialorder %v221_v63, 0.0  ;;  %vm257_vm13 = vcmp.gt.f32.partialorder %v225_v0, 0.0  ;;  %v285_v9 = vmul.f32 0.2, %v221_v63 }
  0x30   : > { %364 = vmatprep.subr.bf16.mxu0 %v347_v1  ;;  %v289_v10 = vmul.f32 0.2, %v225_v0  ;;  %v227_v11 = vunpack.c.l.bf16 %v204_v42  ;;  %vm255_vm14 = vcmp.gt.f32.partialorder %v223_v4, 0.0  ;;  %v287_v12 = vmul.f32 0.2, %v223_v4 }
  0x31   : > { %405 = vmatprep.subr.bf16.mxu1 %v349_v8  ;;  %v317_v13 = vsel %vm253_vm12, %v221_v63, %v285_v9  ;;  %v230_v14 = vunpack.c.h.bf16 %v205_v5  ;;  %v234_v15 = vunpack.c.h.bf16 %v207_v6  ;;  %v232_v17 = vunpack.c.h.bf16 %v206_v7 }
  0x32   : > { %v321_v18 = vsel %vm257_vm13, %v225_v0, %v289_v10  ;;  %vm259_vm15 = vcmp.gt.f32.partialorder %v227_v11, 0.0  ;;  %v291_v19 = vmul.f32 0.2, %v227_v11  ;;  %v319_v20 = vsel %vm255_vm14, %v223_v4, %v287_v12 }
  0x33   : > { %v346_v21 = vpack.c.bf16 %v321_v18, %v317_v13  ;;  %vm262_vm0 = vcmp.gt.f32.partialorder %v230_v14, 0.0  ;;  %vm266_vm1 = vcmp.gt.f32.partialorder %v234_v15, 0.0  ;;  %v294_v22 = vmul.f32 0.2, %v230_v14 }
  0x34   : > { %v323_v23 = vsel %vm259_vm15, %v227_v11, %v291_v19  ;;  %v298_v24 = vmul.f32 0.2, %v234_v15  ;;  %v236_v25 = vunpack.c.h.bf16 %v208_v16  ;;  %vm264_vm2 = vcmp.gt.f32.partialorder %v232_v17, 0.0 }
  0x35   : > { %365 = vmatpush1.bf16.msra.mxu0 %v346_v21  ;;  %v348_v26 = vpack.c.bf16 %v323_v23, %v319_v20  ;;  %v326_v27 = vsel %vm262_vm0, %v230_v14, %v294_v22  ;;  %v296_v28 = vmul.f32 0.2, %v232_v17  ;;  %v229_v29 = vunpack.c.l.bf16 %v205_v5 }
  0x36   : > { %v330_v30 = vsel %vm266_vm1, %v234_v15, %v298_v24  ;;  %vm268_vm3 = vcmp.gt.f32.partialorder %v236_v25, 0.0  ;;  %v300_v31 = vmul.f32 0.2, %v236_v25  ;;  %v233_v32 = vunpack.c.l.bf16 %v207_v6 }
  0x37   : > { %406 = vmatpush1.bf16.msra.mxu1 %v348_v26  ;;  %v351_v34 = vpack.c.bf16 %v330_v30, %v326_v27  ;;  %v328_v35 = vsel %vm264_vm2, %v232_v17, %v296_v28  ;;  %vm261_vm4 = vcmp.gt.f32.partialorder %v229_v29, 0.0  ;;  %v293_v36 = vmul.f32 0.2, %v229_v29 }
  0x38   : > { %v332_v38 = vsel %vm268_vm3, %v236_v25, %v300_v31  ;;  %vm265_vm5 = vcmp.gt.f32.partialorder %v233_v32, 0.0  ;;  %v297_v39 = vmul.f32 0.2, %v233_v32  ;;  %v231_v40 = vunpack.c.l.bf16 %v206_v7 }
  0x39   : > { %366 = vmatprep.subr.bf16.mxu0 %v351_v34  ;;  %v353_v41 = vpack.c.bf16 %v332_v38, %v328_v35  ;;  %v325_v42 = vsel %vm261_vm4, %v229_v29, %v293_v36  ;;  %v235_v43 = vunpack.c.l.bf16 %v208_v16  ;;  %v238_v44 = vunpack.c.h.bf16 %v209_v33  ;;  %v341_v16 = vld [vmem:[%s683_s0] sm:$0xf] }
  0x3a   : > { %v329_v45 = vsel %vm265_vm5, %v233_v32, %v297_v39  ;;  %vm263_vm6 = vcmp.gt.f32.partialorder %v231_v40, 0.0  ;;  %v295_v46 = vmul.f32 0.2, %v231_v40  ;;  %v242_v47 = vunpack.c.h.bf16 %v211_v37 }
  0x3b   : > { %407 = vmatprep.subr.bf16.mxu1 %v353_v41  ;;  %v350_v50 = vpack.c.bf16 %v329_v45, %v325_v42  ;;  %vm267_vm7 = vcmp.gt.f32.partialorder %v235_v43, 0.0  ;;  %v299_v51 = vmul.f32 0.2, %v235_v43  ;;  %vm270_vm8 = vcmp.gt.f32.partialorder %v238_v44, 0.0 }
  0x3c   : > { %v327_v52 = vsel %vm263_vm6, %v231_v40, %v295_v46  ;;  %vm274_vm9 = vcmp.gt.f32.partialorder %v242_v47, 0.0  ;;  %v302_v53 = vmul.f32 0.2, %v238_v44  ;;  %v306_v54 = vmul.f32 0.2, %v242_v47 }
  0x3d   : > { %367 = vmatpush1.bf16.msra.mxu0 %v350_v50  ;;  %v331_v55 = vsel %vm267_vm7, %v235_v43, %v299_v51  ;;  %v240_v56 = vunpack.c.h.bf16 %v210_v48  ;;  %v244_v57 = vunpack.c.h.bf16 %v212_v49  ;;  %v237_v58 = vunpack.c.l.bf16 %v209_v33 }
  0x3e   : > { %v352_v59 = vpack.c.bf16 %v331_v55, %v327_v52  ;;  %v334_v60 = vsel %vm270_vm8, %v238_v44, %v302_v53  ;;  %v338_v61 = vsel %vm274_vm9, %v242_v47, %v306_v54  ;;  %v241_v62 = vunpack.c.l.bf16 %v211_v37 }
  0x3f   : > { %v355_v63 = vpack.c.bf16 %v338_v61, %v334_v60  ;;  %vm272_vm10 = vcmp.gt.f32.partialorder %v240_v56, 0.0  ;;  %vm276_vm11 = vcmp.gt.f32.partialorder %v244_v57, 0.0  ;;  %v304_v0 = vmul.f32 0.2, %v240_v56 }
  0x40   : > { %408 = vmatpush1.bf16.msra.mxu1 %v352_v59  ;;  %v308_v1 = vmul.f32 0.2, %v244_v57  ;;  %vm269_vm12 = vcmp.gt.f32.partialorder %v237_v58, 0.0  ;;  %vm273_vm13 = vcmp.gt.f32.partialorder %v241_v62, 0.0  ;;  %v301_v2 = vmul.f32 0.2, %v237_v58 }
  0x41   : > { %368 = vmatprep.subr.bf16.mxu0 %v355_v63  ;;  %v336_v3 = vsel %vm272_vm10, %v240_v56, %v304_v0  ;;  %v305_v4 = vmul.f32 0.2, %v241_v62  ;;  %v239_v5 = vunpack.c.l.bf16 %v210_v48  ;;  %v243_v6 = vunpack.c.l.bf16 %v212_v49 }
  0x42   : > { %v340_v7 = vsel %vm276_vm11, %v244_v57, %v308_v1  ;;  %v333_v8 = vsel %vm269_vm12, %v237_v58, %v301_v2  ;;  %vm358_vm0 = vcmask 523264  }
  0x43   : > { %v357_v9 = vpack.c.bf16 %v340_v7, %v336_v3  ;;  %v337_v10 = vsel %vm273_vm13, %v241_v62, %v305_v4  ;;  %vm271_vm14 = vcmp.gt.f32.partialorder %v239_v5, 0.0  ;;  %vm275_vm15 = vcmp.gt.f32.partialorder %v243_v6, 0.0 }
  0x44   : > { %v354_v11 = vpack.c.bf16 %v337_v10, %v333_v8  ;;  %v303_v12 = vmul.f32 0.2, %v239_v5  ;;  %v307_v13 = vmul.f32 0.2, %v243_v6 }
  0x45   : > { %409 = vmatprep.subr.bf16.mxu1 %v357_v9 }
  0x46   : > { %369 = vmatpush1.bf16.msra.mxu0 %v354_v11  ;;  %v335_v14 = vsel %vm271_vm14, %v239_v5, %v303_v12  ;;  %v339_v15 = vsel %vm275_vm15, %v243_v6, %v307_v13 }
  0x47   : > { %v356_v17 = vpack.c.bf16 %v339_v15, %v335_v14 }
  0x49   : > { %410 = vmatpush1.bf16.msra.mxu1 %v356_v17  ;;  %521 = vmatmul.mubr.msk.bf16.vlgmr.msra.gmra.mrb[0].mxu0 %vm358_vm0, %v341_v16 }
  0x4c   : > { %522 = vmatmul.mubr.msk.bf16.vlgmr.msra.gmra.mrb[0].mxu1 %vm358_vm0, %v341_v16 }
 0x11c   : > { %v396_v18 = vpop.f32.mrb[0].mxu0 }
 0x11d   : > { %444 = vst [vmem:[%s194_s5] sm:$0xff] %v396_v18  ;;  %v398_v19 = vpop.f32.mrb[1].mxu0 }
 0x11e   : > { %445 = vst [vmem:[%s194_s5 + $0x8] sm:$0xff] %v398_v19  ;;  %v400_v20 = vpop.f32.mrb[2].mxu0 }
 0x11f   : > { %v437_v21 = vpop.f32.mrb[0].mxu1  ;;  %v401_v22 = vpop.f32.mrb[3].mxu0 }
 0x120   : > { %446 = vst [vmem:[%s194_s5 + $0x10] sm:$0xff] %v437_v21  ;;  %v439_v23 = vpop.f32.mrb[1].mxu1 }
 0x121   : > { %447 = vst [vmem:[%s194_s5 + $0x18] sm:$0xff] %v439_v23  ;;  %v441_v24 = vpop.f32.mrb[2].mxu1 }
 0x122   : > { %v442_v25 = vpop.f32.mrb[3].mxu1 }
 0x123 PF: > { %p9_p9 = scmp.ge.s32.totalorder %s608_s13, 6   ;;  %s686_s9 = smov %s569_s10 }
 0x124   : > { %s687_s10 = smov %s617_s16  ;;  %s688_s11 = smov %s608_s13 }
 0x125   :  { %11 = sbr.rel (!%p9_p9) target bundleno = 2 (0x2), region = 86 }

// kernel: turbnetg_forward.7
= control target key start
LH: loop header
LB: loop body
LE: loop exit
PB: predicated region body
PF: predicated region fallthrough
CT: control target
= control target key end

     0   :  { %s785_s9 = smov 0   ;;  %s787_s10 = smov 0   ;;  %s960_s0 = inlined_call_operand.vmem [shape: bf16[8,144], index: 0, kind: input, shape index: {}]   ;;  %s961_s1 = inlined_call_operand.vmem [shape: bf16[144,2048], index: 1, kind: input, shape index: {}]   ;;  %s962_s2 = inlined_call_operand.vmem [shape: f32[8,2048], index: 2, kind: output, shape index: {}]  }
   0x1   :  { %s789_s11 = smov 0  }
   0x2 LB: > { %s612_s12 = sadd.s32 4294967295, %s768_s11   ;;  %s802_s13 = sadd.s32 1, %s768_s11   ;;  %s768_s11 = sphi %s789_s11, %s965_s11   ;;  %s764_s10 = sphi %s787_s10, %s964_s10   ;;  %s760_s9 = sphi %s785_s9, %s963_s9  }
   0x3   : > { %s37_s14 = ssub.s32 %s768_s11, %s802_s13  ;;  %s40_s15 = sadd.s32 1, %s764_s10 }
   0x4   : > { %p38_p0 = scmp.eq.s32.totalorder %s37_s14, 0  ;;  %p47_p1 = scmp.ne.s32.totalorder %s764_s10, %s760_s9 }
   0x5   : > { %p48_p2 = scmp.eq.s32.totalorder %s768_s11, 0  ;;  %p615_p4 = scmp.ge.s32.totalorder %s768_s11, 4 }
   0x6   : > { %s811_s16 = scalar_select %p38_p0, %s764_s10, %s40_s15  }
   0x7   : > { %p49_p3 = por %p48_p2, %p47_p1  ;;  %102 = sbr.rel (%p615_p4) target bundleno = 36 (0x24), region = 20 }
   0xe   : > { %105 = sbr.rel (!%p49_p3) target bundleno = 36 (0x24), region = 24  ;;  %s107_s17 = sand.u32 (%p49_p3), 1, %s764_s10  }
   0xf   : > { %s663_s18 = sshll.u32 (%p49_p3), %s768_s11, 4  ;;  %s664_s19 = smul.u32 (%p49_p3), 288, %s107_s17 }
  0x10   : > { %s819_s22 = scalar_lea.vmem (%p49_p3), %s961_s1, %s663_s18 }
  0x11   : > { %v125_v0 = vld [vmem:[%s819_s22] sm:$0xff] (%p49_p3)  ;;  %v127_v1 = vld [vmem:[%s819_s22 + $0x8] sm:$0xff] (%p49_p3)  ;;  %s827_s23 = scalar_lea.vmem (%p49_p3), [#allocation2], %s664_s19 }
  0x12   : > { %v129_v2 = vld [vmem:[%s819_s22 + $0x40] sm:$0xff] (%p49_p3)  ;;  %v131_v3 = vld [vmem:[%s819_s22 + $0x48] sm:$0xff] (%p49_p3)  ;;  %126 = vst [vmem:[%s827_s23] sm:$0xff] (%p49_p3), %v125_v0  ;;  %128 = vst [vmem:[%s827_s23 + $0x8] sm:$0xff] (%p49_p3), %v127_v1 }
  0x13   : > { %v133_v4 = vld [vmem:[%s819_s22 + $0x80] sm:$0xff] (%p49_p3)  ;;  %v135_v5 = vld [vmem:[%s819_s22 + $0x88] sm:$0xff] (%p49_p3)  ;;  %130 = vst [vmem:[%s827_s23 + $0x10] sm:$0xff] (%p49_p3), %v129_v2  ;;  %132 = vst [vmem:[%s827_s23 + $0x18] sm:$0xff] (%p49_p3), %v131_v3 }
  0x14   : > { %134 = vst [vmem:[%s827_s23 + $0x20] sm:$0xff] (%p49_p3), %v133_v4  ;;  %136 = vst [vmem:[%s827_s23 + $0x28] sm:$0xff] (%p49_p3), %v135_v5  ;;  %v137_v6 = vld [vmem:[%s819_s22 + $0xc0] sm:$0xff] (%p49_p3)  ;;  %v139_v7 = vld [vmem:[%s819_s22 + $0xc8] sm:$0xff] (%p49_p3) }
  0x15   : > { %v141_v8 = vld [vmem:[%s819_s22 + $0x100] sm:$0xff]  ;;  %138 = vst [vmem:[%s827_s23 + $0x30] sm:$0xff] %v137_v6  ;;  %140 = vst [vmem:[%s827_s23 + $0x38] sm:$0xff] %v139_v7  ;;  %v143_v9 = vld [vmem:[%s819_s22 + $0x108] sm:$0xff] }
  0x16   : > { %142 = vst [vmem:[%s827_s23 + $0x40] sm:$0xff] %v141_v8  ;;  %v145_v10 = vld [vmem:[%s819_s22 + $0x140] sm:$0xff]  ;;  %v147_v11 = vld [vmem:[%s819_s22 + $0x148] sm:$0xff]  ;;  %144 = vst [vmem:[%s827_s23 + $0x48] sm:$0xff] %v143_v9 }
  0x17   : > { %146 = vst [vmem:[%s827_s23 + $0x50] sm:$0xff] %v145_v10  ;;  %148 = vst [vmem:[%s827_s23 + $0x58] sm:$0xff] %v147_v11  ;;  %v149_v12 = vld [vmem:[%s819_s22 + $0x180] sm:$0xff]  ;;  %v151_v13 = vld [vmem:[%s819_s22 + $0x188] sm:$0xff] }
  0x18   : > { %v153_v14 = vld [vmem:[%s819_s22 + $0x1c0] sm:$0xff]  ;;  %150 = vst [vmem:[%s827_s23 + $0x60] sm:$0xff] %v149_v12  ;;  %152 = vst [vmem:[%s827_s23 + $0x68] sm:$0xff] %v151_v13  ;;  %v155_v15 = vld [vmem:[%s819_s22 + $0x1c8] sm:$0xff] }
  0x19   : > { %154 = vst [vmem:[%s827_s23 + $0x70] sm:$0xff] %v153_v14  ;;  %v157_v16 = vld [vmem:[%s819_s22 + $0x200] sm:$0xff]  ;;  %v159_v17 = vld [vmem:[%s819_s22 + $0x208] sm:$0xff]  ;;  %156 = vst [vmem:[%s827_s23 + $0x78] sm:$0xff] %v155_v15 }
  0x1a   : > { %158 = vst [vmem:[%s827_s23 + $0x80] sm:$0xff] %v157_v16  ;;  %160 = vst [vmem:[%s827_s23 + $0x88] sm:$0xff] %v159_v17  ;;  %v161_v18 = vld [vmem:[%s819_s22 + $0x240] sm:$0xff]  ;;  %v163_v19 = vld [vmem:[%s819_s22 + $0x248] sm:$0xff] }
  0x1b   : > { %v165_v20 = vld [vmem:[%s819_s22 + $0x280] sm:$0xff]  ;;  %162 = vst [vmem:[%s827_s23 + $0x90] sm:$0xff] %v161_v18  ;;  %164 = vst [vmem:[%s827_s23 + $0x98] sm:$0xff] %v163_v19  ;;  %v167_v21 = vld [vmem:[%s819_s22 + $0x288] sm:$0xff] }
  0x1c   : > { %166 = vst [vmem:[%s827_s23 + $0xa0] sm:$0xff] %v165_v20  ;;  %v169_v22 = vld [vmem:[%s819_s22 + $0x2c0] sm:$0xff]  ;;  %v171_v23 = vld [vmem:[%s819_s22 + $0x2c8] sm:$0xff]  ;;  %168 = vst [vmem:[%s827_s23 + $0xa8] sm:$0xff] %v167_v21 }
  0x1d   : > { %170 = vst [vmem:[%s827_s23 + $0xb0] sm:$0xff] %v169_v22  ;;  %172 = vst [vmem:[%s827_s23 + $0xb8] sm:$0xff] %v171_v23  ;;  %v173_v24 = vld [vmem:[%s819_s22 + $0x300] sm:$0xff]  ;;  %v175_v25 = vld [vmem:[%s819_s22 + $0x308] sm:$0xff] }
  0x1e   : > { %v177_v26 = vld [vmem:[%s819_s22 + $0x340] sm:$0xff]  ;;  %174 = vst [vmem:[%s827_s23 + $0xc0] sm:$0xff] %v173_v24  ;;  %176 = vst [vmem:[%s827_s23 + $0xc8] sm:$0xff] %v175_v25  ;;  %v179_v27 = vld [vmem:[%s819_s22 + $0x348] sm:$0xff] }
  0x1f   : > { %178 = vst [vmem:[%s827_s23 + $0xd0] sm:$0xff] %v177_v26  ;;  %v181_v28 = vld [vmem:[%s819_s22 + $0x380] sm:$0xff]  ;;  %v183_v29 = vld [vmem:[%s819_s22 + $0x388] sm:$0xff]  ;;  %180 = vst [vmem:[%s827_s23 + $0xd8] sm:$0xff] %v179_v27 }
  0x20   : > { %182 = vst [vmem:[%s827_s23 + $0xe0] sm:$0xff] %v181_v28  ;;  %184 = vst [vmem:[%s827_s23 + $0xe8] sm:$0xff] %v183_v29  ;;  %v185_v30 = vld [vmem:[%s819_s22 + $0x3c0] sm:$0xff]  ;;  %v187_v31 = vld [vmem:[%s819_s22 + $0x3c8] sm:$0xff] }
  0x21   : > { %v189_v32 = vld [vmem:[%s819_s22 + $0x400] sm:$0xff]  ;;  %186 = vst [vmem:[%s827_s23 + $0xf0] sm:$0xff] %v185_v30  ;;  %188 = vst [vmem:[%s827_s23 + $0xf8] sm:$0xff] %v187_v31  ;;  %v191_v33 = vld [vmem:[%s819_s22 + $0x408] sm:$0xff] }
  0x22   : > { %190 = vst [vmem:[%s827_s23 + $0x100] sm:$0xff] %v189_v32  ;;  %v193_v34 = vld [vmem:[%s819_s22 + $0x440] sm:$0xff]  ;;  %v195_v35 = vld [vmem:[%s819_s22 + $0x448] sm:$0xff]  ;;  %192 = vst [vmem:[%s827_s23 + $0x108] sm:$0xff] %v191_v33 }
  0x23   : > { %194 = vst [vmem:[%s827_s23 + $0x110] sm:$0xff] %v193_v34  ;;  %196 = vst [vmem:[%s827_s23 + $0x118] sm:$0xff] %v195_v35 }
  0x24 PF: > { %p618_p5 = scmp.ge.s32.totalorder %s768_s11, 1  ;;  %p201_p6 = scmp.lt.s32.totalorder %s768_s11, 5 }
  0x26   : > { %p202_p7 = pnand %p618_p5, %p201_p6 }
  0x27   : > { %s208_s24 = sand.u32 (!%p202_p7), 1, %s760_s9   ;;  %v901_v36 = vld [vmem:[%s960_s0] sm:$0xff] (!%p202_p7)  ;;  %vm460_vm0 = vcmask (!%p202_p7), 130048   ;;  %s619_s29 = sshll.u32 (!%p202_p7), %s612_s12, 2 }
  0x28   : > { %205 = sbr.rel (%p202_p7) target bundleno = 296 (0x128), region = 47  ;;  %v622_v37 = vcombine.high (!%p202_p7), %v901_v36, %v901_v36  ;;  %v621_v10 = vcombine.low (!%p202_p7), %v901_v36, %v901_v36  ;;  %p231_p8 = scmp.lt.s32.totalorder (!%p202_p7), %s619_s29, 15 }
  0x29   : > { %s665_s27 = smul.u32 (!%p202_p7), 288, %s208_s24 }
  0x2a   : > { %659 = vmatprep.mubr.msk.bf16.mxu0 (!%p202_p7), %vm460_vm0, %v622_v37  ;;  %660 = vmatprep.mubr.msk.bf16.mxu1 (!%p202_p7), %vm460_vm0, %v622_v37 }
  0x2b   : > { %s905_s28 = scalar_lea.vmem (!%p202_p7), [#allocation2], %s665_s27 }
  0x2c   : > { %v690_v38 = vld [vmem:[%s905_s28 + $0x4] ss:$16 sps:$4 sm:$0xff] (!%p202_p7)   ;;  %v692_v39 = vld [vmem:[%s905_s28 + $0xc] ss:$16 sps:$4 sm:$0xff] (!%p202_p7)   ;;  %v694_v40 = vld [vmem:[%s905_s28] ss:$16 sps:$4 sm:$0xff] (!%p202_p7)  }
  0x2d   : > { %464 = vmatprep.subr.bf16.mxu0 (!%p202_p7), %v690_v38  ;;  %v695_v41 = vld [vmem:[%s905_s28 + $0x8] ss:$16 sps:$4 sm:$0xff] (!%p202_p7)   ;;  %505 = vmatprep.subr.bf16.mxu1 (!%p202_p7), %v692_v39  ;;  %v696_v42 = vld [vmem:[%s905_s28 + $0x24] ss:$16 sps:$4 sm:$0xff] (!%p202_p7)   ;;  %v698_v43 = vld [vmem:[%s905_s28 + $0x2c] ss:$16 sps:$4 sm:$0xff] (!%p202_p7)  }
  0x2e   : > { %465 = vmatpush1.bf16.msra.mxu0 (!%p202_p7), %v694_v40  ;;  %506 = vmatpush1.bf16.msra.mxu1 (!%p202_p7), %v695_v41  ;;  %v700_v44 = vld [vmem:[%s905_s28 + $0x20] ss:$16 sps:$4 sm:$0xff] (!%p202_p7)   ;;  %v701_v45 = vld [vmem:[%s905_s28 + $0x28] ss:$16 sps:$4 sm:$0xff] (!%p202_p7)   ;;  %v702_v46 = vld [vmem:[%s905_s28 + $0x44] ss:$16 sps:$4 sm:$0xff] (!%p202_p7)  }
  0x2f   : > { %466 = vmatprep.subr.bf16.mxu0 %v696_v42  ;;  %507 = vmatprep.subr.bf16.mxu1 %v698_v43  ;;  %v704_v47 = vld [vmem:[%s905_s28 + $0x4c] ss:$16 sps:$4 sm:$0xff]   ;;  %v706_v48 = vld [vmem:[%s905_s28 + $0x40] ss:$16 sps:$4 sm:$0xff]   ;;  %v707_v49 = vld [vmem:[%s905_s28 + $0x48] ss:$16 sps:$4 sm:$0xff]  }
  0x30   : > { %v708_v50 = vld [vmem:[%s905_s28 + $0x64] ss:$16 sps:$4 sm:$0xff]   ;;  %v710_v51 = vld [vmem:[%s905_s28 + $0x6c] ss:$16 sps:$4 sm:$0xff]   ;;  %v712_v52 = vld [vmem:[%s905_s28 + $0x60] ss:$16 sps:$4 sm:$0xff]  }
  0x31   : > { %v713_v53 = vld [vmem:[%s905_s28 + $0x68] ss:$16 sps:$4 sm:$0xff]   ;;  %v714_v54 = vld [vmem:[%s905_s28 + $0x84] ss:$16 sps:$4 sm:$0xff]   ;;  %v716_v55 = vld [vmem:[%s905_s28 + $0x8c] ss:$16 sps:$4 sm:$0xff]  }
  0x32   : > { %467 = vmatpush1.bf16.msra.mxu0 %v700_v44  ;;  %508 = vmatpush1.bf16.msra.mxu1 %v701_v45  ;;  %v718_v56 = vld [vmem:[%s905_s28 + $0x80] ss:$16 sps:$4 sm:$0xff]   ;;  %v719_v57 = vld [vmem:[%s905_s28 + $0x88] ss:$16 sps:$4 sm:$0xff]   ;;  %v720_v58 = vld [vmem:[%s905_s28 + $0xa4] ss:$16 sps:$4 sm:$0xff]  }
  0x33   : > { %468 = vmatprep.subr.bf16.mxu0 %v702_v46  ;;  %509 = vmatprep.subr.bf16.mxu1 %v704_v47  ;;  %v722_v59 = vld [vmem:[%s905_s28 + $0xac] ss:$16 sps:$4 sm:$0xff]   ;;  %v724_v60 = vld [vmem:[%s905_s28 + $0xa0] ss:$16 sps:$4 sm:$0xff]   ;;  %v725_v61 = vld [vmem:[%s905_s28 + $0xa8] ss:$16 sps:$4 sm:$0xff]  }
  0x34   : > { %v726_v62 = vld [vmem:[%s905_s28 + $0xc4] ss:$16 sps:$4 sm:$0xff]   ;;  %v728_v63 = vld [vmem:[%s905_s28 + $0xcc] ss:$16 sps:$4 sm:$0xff]   ;;  %v730_v0 = vld [vmem:[%s905_s28 + $0xc0] ss:$16 sps:$4 sm:$0xff]  }
  0x35   : > { %v731_v1 = vld [vmem:[%s905_s28 + $0xc8] ss:$16 sps:$4 sm:$0xff]   ;;  %v732_v2 = vld [vmem:[%s905_s28 + $0xe4] ss:$16 sps:$4 sm:$0xff]   ;;  %v734_v3 = vld [vmem:[%s905_s28 + $0xec] ss:$16 sps:$4 sm:$0xff]  }
  0x36   : > { %469 = vmatpush1.bf16.msra.mxu0 %v706_v48  ;;  %510 = vmatpush1.bf16.msra.mxu1 %v707_v49  ;;  %v736_v4 = vld [vmem:[%s905_s28 + $0xe0] ss:$16 sps:$4 sm:$0xff]   ;;  %v737_v5 = vld [vmem:[%s905_s28 + $0xe8] ss:$16 sps:$4 sm:$0xff]   ;;  %v738_v6 = vld [vmem:[%s905_s28 + $0x104] ss:$16 sps:$4 sm:$0xff]  }
  0x37   : > { %470 = vmatprep.subr.bf16.mxu0 %v708_v50  ;;  %511 = vmatprep.subr.bf16.mxu1 %v710_v51  ;;  %v740_v7 = vld [vmem:[%s905_s28 + $0x10c] ss:$16 sps:$4 sm:$0xff]   ;;  %v742_v8 = vld [vmem:[%s905_s28 + $0x100] ss:$16 sps:$4 sm:$0xff]   ;;  %v743_v9 = vld [vmem:[%s905_s28 + $0x108] ss:$16 sps:$4 sm:$0xff]  }
  0x38   : > { %s967_s29 = smov (!%p231_p8, %s619_s29), 15 }
  0x39   : > { %s620_s30 = sshll.u32 %s967_s29, 3 }
  0x3a   : > { %471 = vmatpush1.bf16.msra.mxu0 %v712_v52  ;;  %512 = vmatpush1.bf16.msra.mxu1 %v713_v53  ;;  %s234_s5 = scalar_lea.vmem %s962_s2, %s620_s30 }
  0x3b   : > { %472 = vmatprep.subr.bf16.mxu0 %v714_v54  ;;  %513 = vmatprep.subr.bf16.mxu1 %v716_v55 }
  0x3e   : > { %473 = vmatpush1.bf16.msra.mxu0 %v718_v56  ;;  %514 = vmatpush1.bf16.msra.mxu1 %v719_v57 }
  0x3f   : > { %474 = vmatprep.subr.bf16.mxu0 %v720_v58  ;;  %515 = vmatprep.subr.bf16.mxu1 %v722_v59 }
  0x42   : > { %475 = vmatpush1.bf16.msra.mxu0 %v724_v60  ;;  %516 = vmatpush1.bf16.msra.mxu1 %v725_v61 }
  0x43   : > { %476 = vmatprep.subr.bf16.mxu0 %v726_v62  ;;  %517 = vmatprep.subr.bf16.mxu1 %v728_v63 }
  0x46   : > { %477 = vmatpush1.bf16.msra.mxu0 %v730_v0  ;;  %518 = vmatpush1.bf16.msra.mxu1 %v731_v1 }
  0x47   : > { %478 = vmatprep.subr.bf16.mxu0 %v732_v2  ;;  %519 = vmatprep.subr.bf16.mxu1 %v734_v3 }
  0x4a   : > { %479 = vmatpush1.bf16.msra.mxu0 %v736_v4  ;;  %520 = vmatpush1.bf16.msra.mxu1 %v737_v5 }
  0x4b   : > { %480 = vmatprep.subr.bf16.mxu0 %v738_v6  ;;  %521 = vmatprep.subr.bf16.mxu1 %v740_v7 }
  0x4e   : > { %481 = vmatpush1.bf16.msra.mxu0 %v742_v8  ;;  %522 = vmatpush1.bf16.msra.mxu1 %v743_v9 }
  0x51   : > { %497 = vmatmul.mubr.bf16.vlgmr.msra.gmra.mrb[0].mxu0 %v621_v10  ;;  %538 = vmatmul.mubr.bf16.vlgmr.msra.gmra.mrb[0].mxu1 %v621_v10 }
 0x124   : > { %v498_v11 = vpop.f32.mrb[0].mxu0  ;;  %v539_v12 = vpop.f32.mrb[0].mxu1 }
 0x125   : > { %546 = vst [vmem:[%s234_s5] sm:$0xff] %v498_v11  ;;  %548 = vst [vmem:[%s234_s5 + $0x10] sm:$0xff] %v539_v12  ;;  %v500_v13 = vpop.f32.mrb[1].mxu0  ;;  %v541_v14 = vpop.f32.mrb[1].mxu1 }
 0x126   : > { %547 = vst [vmem:[%s234_s5 + $0x8] sm:$0xff] %v500_v13  ;;  %549 = vst [vmem:[%s234_s5 + $0x18] sm:$0xff] %v541_v14  ;;  %v502_v15 = vpop.f32.mrb[2].mxu0  ;;  %v543_v16 = vpop.f32.mrb[2].mxu1 }
 0x127   : > { %v503_v17 = vpop.f32.mrb[3].mxu0  ;;  %v544_v18 = vpop.f32.mrb[3].mxu1 }
 0x128 PF: > { %p9_p9 = scmp.ge.s32.totalorder %s802_s13, 6   ;;  %s963_s9 = smov %s764_s10 }
 0x129   : > { %s964_s10 = smov %s811_s16  ;;  %s965_s11 = smov %s802_s13 }
 0x12a   :  { %11 = sbr.rel (!%p9_p9) target bundleno = 2 (0x2), region = 86 }

// kernel: turbnetg_forward.8
= control target key start
LH: loop header
LB: loop body
LE: loop exit
PB: predicated region body
PF: predicated region fallthrough
CT: control target
= control target key end

     0   :  { %s1156_s9 = smov 0   ;;  %s1158_s10 = smov 0   ;;  %s1451_s0 = inlined_call_operand.vmem [shape: bf16[4,144], index: 0, kind: input, shape index: {}]   ;;  %s1452_s1 = inlined_call_operand.vmem [shape: bf16[144,8192], index: 1, kind: input, shape index: {}]   ;;  %s1453_s2 = inlined_call_operand.vmem [shape: f32[4,8192], index: 2, kind: output, shape index: {}]  }
   0x1   :  { %s1160_s11 = smov 0  }
   0x2 LB: > { %s1002_s12 = sadd.s32 4294967295, %s1139_s11   ;;  %s1173_s13 = sadd.s32 1, %s1139_s11   ;;  %s1139_s11 = sphi %s1160_s11, %s1456_s11   ;;  %s1135_s10 = sphi %s1158_s10, %s1455_s10   ;;  %s1131_s9 = sphi %s1156_s9, %s1454_s9  }
   0x3   : > { %s37_s14 = ssub.s32 %s1139_s11, %s1173_s13  ;;  %s40_s15 = sadd.s32 1, %s1135_s10 }
   0x4   : > { %p38_p0 = scmp.eq.s32.totalorder %s37_s14, 0  ;;  %p47_p1 = scmp.ne.s32.totalorder %s1135_s10, %s1131_s9 }
   0x5   : > { %p48_p2 = scmp.eq.s32.totalorder %s1139_s11, 0  ;;  %p1005_p4 = scmp.ge.s32.totalorder %s1139_s11, 8 }
   0x6   : > { %s1182_s16 = scalar_select %p38_p0, %s1135_s10, %s40_s15  }
   0x7   : > { %p49_p3 = por %p48_p2, %p47_p1  ;;  %102 = sbr.rel (%p1005_p4) target bundleno = 55 (0x37), region = 20 }
   0xe   : > { %105 = sbr.rel (!%p49_p3) target bundleno = 55 (0x37), region = 24  ;;  %s107_s17 = sand.u32 (%p49_p3), 1, %s1135_s10  }
   0xf   : > { %s1090_s18 = sshll.u32 (%p49_p3), %s1139_s11, 5  ;;  %s1091_s19 = smul.u32 (%p49_p3), 576, %s107_s17 }
  0x10   : > { %s1190_s22 = scalar_lea.vmem (%p49_p3), %s1452_s1, %s1090_s18 }
  0x11   : > { %v125_v0 = vld [vmem:[%s1190_s22] sm:$0xff] (%p49_p3)  ;;  %v127_v1 = vld [vmem:[%s1190_s22 + $0x8] sm:$0xff] (%p49_p3)  ;;  %v129_v2 = vld [vmem:[%s1190_s22 + $0x10] sm:$0xff] (%p49_p3)  ;;  %s1198_s23 = scalar_lea.vmem (%p49_p3), [#allocation2], %s1091_s19 }
  0x12   : > { %v131_v3 = vld [vmem:[%s1190_s22 + $0x18] sm:$0xff] (%p49_p3)  ;;  %v133_v4 = vld [vmem:[%s1190_s22 + $0x100] sm:$0xff] (%p49_p3)  ;;  %v135_v5 = vld [vmem:[%s1190_s22 + $0x108] sm:$0xff] (%p49_p3)  ;;  %126 = vst [vmem:[%s1198_s23] sm:$0xff] (%p49_p3), %v125_v0 }
  0x13   : > { %128 = vst [vmem:[%s1198_s23 + $0x8] sm:$0xff] (%p49_p3), %v127_v1  ;;  %130 = vst [vmem:[%s1198_s23 + $0x10] sm:$0xff] (%p49_p3), %v129_v2  ;;  %v137_v6 = vld [vmem:[%s1190_s22 + $0x110] sm:$0xff] (%p49_p3)  ;;  %v139_v7 = vld [vmem:[%s1190_s22 + $0x118] sm:$0xff] (%p49_p3) }
  0x14   : > { %132 = vst [vmem:[%s1198_s23 + $0x18] sm:$0xff] (%p49_p3), %v131_v3  ;;  %134 = vst [vmem:[%s1198_s23 + $0x20] sm:$0xff] (%p49_p3), %v133_v4  ;;  %v141_v8 = vld [vmem:[%s1190_s22 + $0x200] sm:$0xff] (%p49_p3)  ;;  %v143_v9 = vld [vmem:[%s1190_s22 + $0x208] sm:$0xff] (%p49_p3) }
  0x15   : > { %136 = vst [vmem:[%s1198_s23 + $0x28] sm:$0xff] %v135_v5  ;;  %138 = vst [vmem:[%s1198_s23 + $0x30] sm:$0xff] %v137_v6  ;;  %v145_v10 = vld [vmem:[%s1190_s22 + $0x210] sm:$0xff]  ;;  %v147_v11 = vld [vmem:[%s1190_s22 + $0x218] sm:$0xff] }
  0x16   : > { %140 = vst [vmem:[%s1198_s23 + $0x38] sm:$0xff] %v139_v7  ;;  %142 = vst [vmem:[%s1198_s23 + $0x40] sm:$0xff] %v141_v8  ;;  %v149_v12 = vld [vmem:[%s1190_s22 + $0x300] sm:$0xff]  ;;  %v151_v13 = vld [vmem:[%s1190_s22 + $0x308] sm:$0xff] }
  0x17   : > { %144 = vst [vmem:[%s1198_s23 + $0x48] sm:$0xff] %v143_v9  ;;  %146 = vst [vmem:[%s1198_s23 + $0x50] sm:$0xff] %v145_v10  ;;  %v153_v14 = vld [vmem:[%s1190_s22 + $0x310] sm:$0xff]  ;;  %v155_v15 = vld [vmem:[%s1190_s22 + $0x318] sm:$0xff] }
  0x18   : > { %148 = vst [vmem:[%s1198_s23 + $0x58] sm:$0xff] %v147_v11  ;;  %150 = vst [vmem:[%s1198_s23 + $0x60] sm:$0xff] %v149_v12  ;;  %v157_v16 = vld [vmem:[%s1190_s22 + $0x400] sm:$0xff]  ;;  %v159_v17 = vld [vmem:[%s1190_s22 + $0x408] sm:$0xff] }
  0x19   : > { %152 = vst [vmem:[%s1198_s23 + $0x68] sm:$0xff] %v151_v13  ;;  %154 = vst [vmem:[%s1198_s23 + $0x70] sm:$0xff] %v153_v14  ;;  %v161_v18 = vld [vmem:[%s1190_s22 + $0x410] sm:$0xff]  ;;  %v163_v19 = vld [vmem:[%s1190_s22 + $0x418] sm:$0xff] }
  0x1a   : > { %156 = vst [vmem:[%s1198_s23 + $0x78] sm:$0xff] %v155_v15  ;;  %158 = vst [vmem:[%s1198_s23 + $0x80] sm:$0xff] %v157_v16  ;;  %v165_v20 = vld [vmem:[%s1190_s22 + $0x500] sm:$0xff]  ;;  %v167_v21 = vld [vmem:[%s1190_s22 + $0x508] sm:$0xff] }
  0x1b   : > { %160 = vst [vmem:[%s1198_s23 + $0x88] sm:$0xff] %v159_v17  ;;  %162 = vst [vmem:[%s1198_s23 + $0x90] sm:$0xff] %v161_v18  ;;  %v169_v22 = vld [vmem:[%s1190_s22 + $0x510] sm:$0xff]  ;;  %v171_v23 = vld [vmem:[%s1190_s22 + $0x518] sm:$0xff] }
  0x1c   : > { %164 = vst [vmem:[%s1198_s23 + $0x98] sm:$0xff] %v163_v19  ;;  %166 = vst [vmem:[%s1198_s23 + $0xa0] sm:$0xff] %v165_v20  ;;  %v173_v24 = vld [vmem:[%s1190_s22 + $0x600] sm:$0xff]  ;;  %v175_v25 = vld [vmem:[%s1190_s22 + $0x608] sm:$0xff] }
  0x1d   : > { %168 = vst [vmem:[%s1198_s23 + $0xa8] sm:$0xff] %v167_v21  ;;  %170 = vst [vmem:[%s1198_s23 + $0xb0] sm:$0xff] %v169_v22  ;;  %v177_v26 = vld [vmem:[%s1190_s22 + $0x610] sm:$0xff]  ;;  %v179_v27 = vld [vmem:[%s1190_s22 + $0x618] sm:$0xff] }
  0x1e   : > { %172 = vst [vmem:[%s1198_s23 + $0xb8] sm:$0xff] %v171_v23  ;;  %174 = vst [vmem:[%s1198_s23 + $0xc0] sm:$0xff] %v173_v24  ;;  %v181_v28 = vld [vmem:[%s1190_s22 + $0x700] sm:$0xff]  ;;  %v183_v29 = vld [vmem:[%s1190_s22 + $0x708] sm:$0xff] }
  0x1f   : > { %176 = vst [vmem:[%s1198_s23 + $0xc8] sm:$0xff] %v175_v25  ;;  %178 = vst [vmem:[%s1198_s23 + $0xd0] sm:$0xff] %v177_v26  ;;  %v185_v30 = vld [vmem:[%s1190_s22 + $0x710] sm:$0xff]  ;;  %v187_v31 = vld [vmem:[%s1190_s22 + $0x718] sm:$0xff] }
  0x20   : > { %180 = vst [vmem:[%s1198_s23 + $0xd8] sm:$0xff] %v179_v27  ;;  %182 = vst [vmem:[%s1198_s23 + $0xe0] sm:$0xff] %v181_v28  ;;  %v189_v32 = vld [vmem:[%s1190_s22 + $0x800] sm:$0xff]  ;;  %v191_v33 = vld [vmem:[%s1190_s22 + $0x808] sm:$0xff] }
  0x21   : > { %184 = vst [vmem:[%s1198_s23 + $0xe8] sm:$0xff] %v183_v29  ;;  %186 = vst [vmem:[%s1198_s23 + $0xf0] sm:$0xff] %v185_v30  ;;  %v193_v34 = vld [vmem:[%s1190_s22 + $0x810] sm:$0xff]  ;;  %v195_v35 = vld [vmem:[%s1190_s22 + $0x818] sm:$0xff] }
  0x22   : > { %188 = vst [vmem:[%s1198_s23 + $0xf8] sm:$0xff] %v187_v31  ;;  %190 = vst [vmem:[%s1198_s23 + $0x100] sm:$0xff] %v189_v32  ;;  %v197_v36 = vld [vmem:[%s1190_s22 + $0x900] sm:$0xff]  ;;  %v199_v37 = vld [vmem:[%s1190_s22 + $0x908] sm:$0xff] }
  0x23   : > { %192 = vst [vmem:[%s1198_s23 + $0x108] sm:$0xff] %v191_v33  ;;  %194 = vst [vmem:[%s1198_s23 + $0x110] sm:$0xff] %v193_v34  ;;  %v201_v38 = vld [vmem:[%s1190_s22 + $0x910] sm:$0xff]  ;;  %v203_v39 = vld [vmem:[%s1190_s22 + $0x918] sm:$0xff] }
  0x24   : > { %196 = vst [vmem:[%s1198_s23 + $0x118] sm:$0xff] %v195_v35  ;;  %198 = vst [vmem:[%s1198_s23 + $0x120] sm:$0xff] %v197_v36  ;;  %v205_v40 = vld [vmem:[%s1190_s22 + $0xa00] sm:$0xff]  ;;  %v207_v41 = vld [vmem:[%s1190_s22 + $0xa08] sm:$0xff] }
  0x25   : > { %200 = vst [vmem:[%s1198_s23 + $0x128] sm:$0xff] %v199_v37  ;;  %202 = vst [vmem:[%s1198_s23 + $0x130] sm:$0xff] %v201_v38  ;;  %v209_v42 = vld [vmem:[%s1190_s22 + $0xa10] sm:$0xff]  ;;  %v211_v43 = vld [vmem:[%s1190_s22 + $0xa18] sm:$0xff] }
  0x26   : > { %204 = vst [vmem:[%s1198_s23 + $0x138] sm:$0xff] %v203_v39  ;;  %206 = vst [vmem:[%s1198_s23 + $0x140] sm:$0xff] %v205_v40  ;;  %v213_v44 = vld [vmem:[%s1190_s22 + $0xb00] sm:$0xff]  ;;  %v215_v45 = vld [vmem:[%s1190_s22 + $0xb08] sm:$0xff] }
  0x27   : > { %208 = vst [vmem:[%s1198_s23 + $0x148] sm:$0xff] %v207_v41  ;;  %210 = vst [vmem:[%s1198_s23 + $0x150] sm:$0xff] %v209_v42  ;;  %v217_v46 = vld [vmem:[%s1190_s22 + $0xb10] sm:$0xff]  ;;  %v219_v47 = vld [vmem:[%s1190_s22 + $0xb18] sm:$0xff] }
  0x28   : > { %212 = vst [vmem:[%s1198_s23 + $0x158] sm:$0xff] %v211_v43  ;;  %214 = vst [vmem:[%s1198_s23 + $0x160] sm:$0xff] %v213_v44  ;;  %v221_v48 = vld [vmem:[%s1190_s22 + $0xc00] sm:$0xff]  ;;  %v223_v49 = vld [vmem:[%s1190_s22 + $0xc08] sm:$0xff] }
  0x29   : > { %216 = vst [vmem:[%s1198_s23 + $0x168] sm:$0xff] %v215_v45  ;;  %218 = vst [vmem:[%s1198_s23 + $0x170] sm:$0xff] %v217_v46  ;;  %v225_v50 = vld [vmem:[%s1190_s22 + $0xc10] sm:$0xff]  ;;  %v227_v51 = vld [vmem:[%s1190_s22 + $0xc18] sm:$0xff] }
  0x2a   : > { %220 = vst [vmem:[%s1198_s23 + $0x178] sm:$0xff] %v219_v47  ;;  %222 = vst [vmem:[%s1198_s23 + $0x180] sm:$0xff] %v221_v48  ;;  %v229_v52 = vld [vmem:[%s1190_s22 + $0xd00] sm:$0xff]  ;;  %v231_v53 = vld [vmem:[%s1190_s22 + $0xd08] sm:$0xff] }
  0x2b   : > { %224 = vst [vmem:[%s1198_s23 + $0x188] sm:$0xff] %v223_v49  ;;  %226 = vst [vmem:[%s1198_s23 + $0x190] sm:$0xff] %v225_v50  ;;  %v233_v54 = vld [vmem:[%s1190_s22 + $0xd10] sm:$0xff]  ;;  %v235_v55 = vld [vmem:[%s1190_s22 + $0xd18] sm:$0xff] }
  0x2c   : > { %228 = vst [vmem:[%s1198_s23 + $0x198] sm:$0xff] %v227_v51  ;;  %230 = vst [vmem:[%s1198_s23 + $0x1a0] sm:$0xff] %v229_v52  ;;  %v237_v56 = vld [vmem:[%s1190_s22 + $0xe00] sm:$0xff]  ;;  %v239_v57 = vld [vmem:[%s1190_s22 + $0xe08] sm:$0xff] }
  0x2d   : > { %232 = vst [vmem:[%s1198_s23 + $0x1a8] sm:$0xff] %v231_v53  ;;  %234 = vst [vmem:[%s1198_s23 + $0x1b0] sm:$0xff] %v233_v54  ;;  %v241_v58 = vld [vmem:[%s1190_s22 + $0xe10] sm:$0xff]  ;;  %v243_v59 = vld [vmem:[%s1190_s22 + $0xe18] sm:$0xff] }
  0x2e   : > { %236 = vst [vmem:[%s1198_s23 + $0x1b8] sm:$0xff] %v235_v55  ;;  %238 = vst [vmem:[%s1198_s23 + $0x1c0] sm:$0xff] %v237_v56  ;;  %v245_v60 = vld [vmem:[%s1190_s22 + $0xf00] sm:$0xff]  ;;  %v247_v61 = vld [vmem:[%s1190_s22 + $0xf08] sm:$0xff] }
  0x2f   : > { %240 = vst [vmem:[%s1198_s23 + $0x1c8] sm:$0xff] %v239_v57  ;;  %242 = vst [vmem:[%s1198_s23 + $0x1d0] sm:$0xff] %v241_v58  ;;  %v249_v62 = vld [vmem:[%s1190_s22 + $0xf10] sm:$0xff]  ;;  %v251_v63 = vld [vmem:[%s1190_s22 + $0xf18] sm:$0xff] }
  0x30   : > { %244 = vst [vmem:[%s1198_s23 + $0x1d8] sm:$0xff] %v243_v59  ;;  %246 = vst [vmem:[%s1198_s23 + $0x1e0] sm:$0xff] %v245_v60  ;;  %v253_v0 = vld [vmem:[%s1190_s22 + $0x1000] sm:$0xff]  ;;  %v255_v1 = vld [vmem:[%s1190_s22 + $0x1008] sm:$0xff] }
  0x31   : > { %248 = vst [vmem:[%s1198_s23 + $0x1e8] sm:$0xff] %v247_v61  ;;  %250 = vst [vmem:[%s1198_s23 + $0x1f0] sm:$0xff] %v249_v62  ;;  %v257_v2 = vld [vmem:[%s1190_s22 + $0x1010] sm:$0xff]  ;;  %v259_v3 = vld [vmem:[%s1190_s22 + $0x1018] sm:$0xff] }
  0x32   : > { %252 = vst [vmem:[%s1198_s23 + $0x1f8] sm:$0xff] %v251_v63  ;;  %254 = vst [vmem:[%s1198_s23 + $0x200] sm:$0xff] %v253_v0  ;;  %v261_v4 = vld [vmem:[%s1190_s22 + $0x1100] sm:$0xff]  ;;  %v263_v5 = vld [vmem:[%s1190_s22 + $0x1108] sm:$0xff] }
  0x33   : > { %256 = vst [vmem:[%s1198_s23 + $0x208] sm:$0xff] %v255_v1  ;;  %258 = vst [vmem:[%s1198_s23 + $0x210] sm:$0xff] %v257_v2  ;;  %v265_v6 = vld [vmem:[%s1190_s22 + $0x1110] sm:$0xff]  ;;  %v267_v7 = vld [vmem:[%s1190_s22 + $0x1118] sm:$0xff] }
  0x34   : > { %260 = vst [vmem:[%s1198_s23 + $0x218] sm:$0xff] %v259_v3  ;;  %262 = vst [vmem:[%s1198_s23 + $0x220] sm:$0xff] %v261_v4 }
  0x35   : > { %264 = vst [vmem:[%s1198_s23 + $0x228] sm:$0xff] %v263_v5  ;;  %266 = vst [vmem:[%s1198_s23 + $0x230] sm:$0xff] %v265_v6 }
  0x36   : > { %268 = vst [vmem:[%s1198_s23 + $0x238] sm:$0xff] %v267_v7 }
  0x37 PF: > { %p1008_p5 = scmp.ge.s32.totalorder %s1139_s11, 1  ;;  %p273_p6 = scmp.lt.s32.totalorder %s1139_s11, 9 }
  0x39   : > { %p274_p7 = pnand %p1008_p5, %p273_p6 }
  0x3a   : > { %s280_s24 = sand.u32 (!%p274_p7), 1, %s1131_s9   ;;  %v1344_v8 = vld.sshfl [vmem:[%s1451_s0] sm:$0x33 pattern:$0x76325410] (!%p274_p7)  ;;  %vm752_vm0 = vcmask (!%p274_p7), 130048  }
  0x3b   : > { %277 = sbr.rel (%p274_p7) target bundleno = 355 (0x163), region = 47  ;;  %v1348_v9 = vcombine.high (!%p274_p7), %v1344_v8, %v1344_v8  ;;  %s1009_s29 = sshll.u32 (!%p274_p7), %s1002_s12, 3 }
  0x3c   : > { %s1092_s27 = smul.u32 (!%p274_p7), 576, %s280_s24  ;;  %p303_p8 = scmp.lt.s32.totalorder (!%p274_p7), %s1009_s29, 63 }
  0x3d   : > { %1084 = vmatprep.mubr.msk.bf16.mxu0 (!%p274_p7), %vm752_vm0, %v1348_v9  ;;  %1085 = vmatprep.mubr.msk.bf16.mxu1 (!%p274_p7), %vm752_vm0, %v1348_v9 }
  0x3e   : > { %s1354_s28 = scalar_lea.vmem (!%p274_p7), [#allocation2], %s1092_s27 }
  0x3f   : > { %v309_v10 = vld [vmem:[%s1354_s28] sm:$0xff] (!%p274_p7)  ;;  %v310_v12 = vld [vmem:[%s1354_s28 + $0x8] sm:$0xff] (!%p274_p7) }
  0x40   : > { %v313_v11 = vld [vmem:[%s1354_s28 + $0x20] sm:$0xff] (!%p274_p7)  ;;  %v314_v14 = vld [vmem:[%s1354_s28 + $0x28] sm:$0xff] (!%p274_p7) }
  0x41   : > { %v1013_v13 = vcombine.high (!%p274_p7), %v309_v10, %v313_v11  ;;  %v1012_v15 = vcombine.low (!%p274_p7), %v309_v10, %v313_v11  ;;  %v317_v16 = vld [vmem:[%s1354_s28 + $0x40] sm:$0xff] (!%p274_p7)  ;;  %v1015_v18 = vcombine.high (!%p274_p7), %v310_v12, %v314_v14  ;;  %v1014_v19 = vcombine.low (!%p274_p7), %v310_v12, %v314_v14  ;;  %v318_v21 = vld [vmem:[%s1354_s28 + $0x48] sm:$0xff] (!%p274_p7) }
  0x42   : > { %v321_v17 = vld [vmem:[%s1354_s28 + $0x60] sm:$0xff]  ;;  %v322_v22 = vld [vmem:[%s1354_s28 + $0x68] sm:$0xff]  ;;  %s1458_s29 = smov (!%p303_p8, %s1009_s29), 63 }
  0x43   : > { %v1021_v20 = vcombine.high %v317_v16, %v321_v17  ;;  %v325_v23 = vld [vmem:[%s1354_s28 + $0x80] sm:$0xff]  ;;  %756 = vmatprep.subr.bf16.mxu0 %v1013_v13  ;;  %v1023_v24 = vcombine.high %v318_v21, %v322_v22  ;;  %v326_v26 = vld [vmem:[%s1354_s28 + $0x88] sm:$0xff]  ;;  %797 = vmatprep.subr.bf16.mxu1 %v1015_v18  ;;  %v1020_v28 = vcombine.low %v317_v16, %v321_v17  ;;  %v311_v18 = vld [vmem:[%s1354_s28 + $0x10] sm:$0xff]  ;;  %s1010_s30 = sshll.u32 %s1458_s29, 2 }
  0x44   : > { %v329_v25 = vld [vmem:[%s1354_s28 + $0xa0] sm:$0xff]  ;;  %v330_v27 = vld [vmem:[%s1354_s28 + $0xa8] sm:$0xff]  ;;  %757 = vmatpush1.bf16.msra.mxu0 %v1012_v15  ;;  %798 = vmatpush1.bf16.msra.mxu1 %v1014_v19  ;;  %v1022_v29 = vcombine.low %v318_v21, %v322_v22  ;;  %v315_v19 = vld [vmem:[%s1354_s28 + $0x30] sm:$0xff]  ;;  %s306_s5 = scalar_lea.vmem %s1453_s2, %s1010_s30 }
  0x45   : > { %758 = vmatprep.subr.bf16.mxu0 %v1021_v20  ;;  %v1029_v30 = vcombine.high %v325_v23, %v329_v25  ;;  %799 = vmatprep.subr.bf16.mxu1 %v1023_v24  ;;  %v1031_v31 = vcombine.high %v326_v26, %v330_v27  ;;  %v333_v32 = vld [vmem:[%s1354_s28 + $0xc0] sm:$0xff]  ;;  %v334_v34 = vld [vmem:[%s1354_s28 + $0xc8] sm:$0xff]  ;;  %v1028_v36 = vcombine.low %v325_v23, %v329_v25  ;;  %v312_v20 = vld [vmem:[%s1354_s28 + $0x18] sm:$0xff] }
  0x46   : > { %v337_v33 = vld [vmem:[%s1354_s28 + $0xe0] sm:$0xff]  ;;  %v338_v35 = vld [vmem:[%s1354_s28 + $0xe8] sm:$0xff]  ;;  %v1030_v37 = vcombine.low %v326_v26, %v330_v27  ;;  %v316_v21 = vld [vmem:[%s1354_s28 + $0x38] sm:$0xff]  ;;  %v1017_v24 = vcombine.high %v311_v18, %v315_v19 }
  0x47   : > { %v1037_v38 = vcombine.high %v333_v32, %v337_v33  ;;  %v1039_v39 = vcombine.high %v334_v34, %v338_v35  ;;  %v341_v40 = vld [vmem:[%s1354_s28 + $0x100] sm:$0xff]  ;;  %v342_v42 = vld [vmem:[%s1354_s28 + $0x108] sm:$0xff]  ;;  %v1036_v44 = vcombine.low %v333_v32, %v337_v33  ;;  %v1038_v45 = vcombine.low %v334_v34, %v338_v35  ;;  %v319_v26 = vld [vmem:[%s1354_s28 + $0x50] sm:$0xff] }
  0x48   : > { %759 = vmatpush1.bf16.msra.mxu0 %v1020_v28  ;;  %800 = vmatpush1.bf16.msra.mxu1 %v1022_v29  ;;  %v345_v41 = vld [vmem:[%s1354_s28 + $0x120] sm:$0xff]  ;;  %v346_v43 = vld [vmem:[%s1354_s28 + $0x128] sm:$0xff]  ;;  %v1019_v25 = vcombine.high %v312_v20, %v316_v21  ;;  %v323_v27 = vld [vmem:[%s1354_s28 + $0x70] sm:$0xff] }
  0x49   : > { %760 = vmatprep.subr.bf16.mxu0 %v1029_v30  ;;  %801 = vmatprep.subr.bf16.mxu1 %v1031_v31  ;;  %v1045_v46 = vcombine.high %v341_v40, %v345_v41  ;;  %v1047_v47 = vcombine.high %v342_v42, %v346_v43  ;;  %v349_v48 = vld [vmem:[%s1354_s28 + $0x140] sm:$0xff]  ;;  %v350_v50 = vld [vmem:[%s1354_s28 + $0x148] sm:$0xff]  ;;  %v1044_v52 = vcombine.low %v341_v40, %v345_v41  ;;  %v320_v28 = vld [vmem:[%s1354_s28 + $0x58] sm:$0xff] }
  0x4a   : > { %v353_v49 = vld [vmem:[%s1354_s28 + $0x160] sm:$0xff]  ;;  %v354_v51 = vld [vmem:[%s1354_s28 + $0x168] sm:$0xff]  ;;  %v1046_v53 = vcombine.low %v342_v42, %v346_v43  ;;  %v324_v29 = vld [vmem:[%s1354_s28 + $0x78] sm:$0xff]  ;;  %v1016_v30 = vcombine.low %v311_v18, %v315_v19  ;;  %v1018_v31 = vcombine.low %v312_v20, %v316_v21  ;;  %v1025_v32 = vcombine.high %v319_v26, %v323_v27 }
  0x4b   : > { %v1053_v54 = vcombine.high %v349_v48, %v353_v49  ;;  %v1055_v55 = vcombine.high %v350_v50, %v354_v51  ;;  %v357_v56 = vld [vmem:[%s1354_s28 + $0x180] sm:$0xff]  ;;  %v358_v58 = vld [vmem:[%s1354_s28 + $0x188] sm:$0xff]  ;;  %v1052_v60 = vcombine.low %v349_v48, %v353_v49  ;;  %v1054_v61 = vcombine.low %v350_v50, %v354_v51  ;;  %v327_v34 = vld [vmem:[%s1354_s28 + $0x90] sm:$0xff] }
  0x4c   : > { %761 = vmatpush1.bf16.msra.mxu0 %v1028_v36  ;;  %802 = vmatpush1.bf16.msra.mxu1 %v1030_v37  ;;  %v361_v57 = vld [vmem:[%s1354_s28 + $0x1a0] sm:$0xff]  ;;  %v362_v59 = vld [vmem:[%s1354_s28 + $0x1a8] sm:$0xff]  ;;  %v1027_v33 = vcombine.high %v320_v28, %v324_v29  ;;  %v331_v35 = vld [vmem:[%s1354_s28 + $0xb0] sm:$0xff] }
  0x4d   : > { %762 = vmatprep.subr.bf16.mxu0 %v1037_v38  ;;  %803 = vmatprep.subr.bf16.mxu1 %v1039_v39  ;;  %v1061_v62 = vcombine.high %v357_v56, %v361_v57  ;;  %v1063_v63 = vcombine.high %v358_v58, %v362_v59  ;;  %v365_v0 = vld [vmem:[%s1354_s28 + $0x1c0] sm:$0xff]  ;;  %v366_v2 = vld [vmem:[%s1354_s28 + $0x1c8] sm:$0xff]  ;;  %v1060_v4 = vcombine.low %v357_v56, %v361_v57  ;;  %v328_v36 = vld [vmem:[%s1354_s28 + $0x98] sm:$0xff] }
  0x4e   : > { %v369_v1 = vld [vmem:[%s1354_s28 + $0x1e0] sm:$0xff]  ;;  %v370_v3 = vld [vmem:[%s1354_s28 + $0x1e8] sm:$0xff]  ;;  %v1062_v5 = vcombine.low %v358_v58, %v362_v59  ;;  %v332_v37 = vld [vmem:[%s1354_s28 + $0xb8] sm:$0xff]  ;;  %v1024_v38 = vcombine.low %v319_v26, %v323_v27  ;;  %v1026_v39 = vcombine.low %v320_v28, %v324_v29  ;;  %v1033_v40 = vcombine.high %v327_v34, %v331_v35 }
  0x4f   : > { %v1069_v6 = vcombine.high %v365_v0, %v369_v1  ;;  %v1071_v7 = vcombine.high %v366_v2, %v370_v3  ;;  %v373_v10 = vld [vmem:[%s1354_s28 + $0x200] sm:$0xff]  ;;  %v374_v12 = vld [vmem:[%s1354_s28 + $0x208] sm:$0xff]  ;;  %v1068_v14 = vcombine.low %v365_v0, %v369_v1  ;;  %v1070_v15 = vcombine.low %v366_v2, %v370_v3  ;;  %v335_v42 = vld [vmem:[%s1354_s28 + $0xd0] sm:$0xff] }
  0x50   : > { %763 = vmatpush1.bf16.msra.mxu0 %v1036_v44  ;;  %804 = vmatpush1.bf16.msra.mxu1 %v1038_v45  ;;  %v377_v11 = vld [vmem:[%s1354_s28 + $0x220] sm:$0xff]  ;;  %v378_v13 = vld [vmem:[%s1354_s28 + $0x228] sm:$0xff]  ;;  %v1035_v41 = vcombine.high %v328_v36, %v332_v37  ;;  %v339_v43 = vld [vmem:[%s1354_s28 + $0xf0] sm:$0xff] }
  0x51   : > { %764 = vmatprep.subr.bf16.mxu0 %v1045_v46  ;;  %805 = vmatprep.subr.bf16.mxu1 %v1047_v47  ;;  %v1077_v16 = vcombine.high %v373_v10, %v377_v11  ;;  %v1079_v17 = vcombine.high %v374_v12, %v378_v13  ;;  %v1076_v22 = vcombine.low %v373_v10, %v377_v11  ;;  %v336_v44 = vld [vmem:[%s1354_s28 + $0xd8] sm:$0xff]  ;;  %v343_v50 = vld [vmem:[%s1354_s28 + $0x110] sm:$0xff] }
  0x52   : > { %v1078_v23 = vcombine.low %v374_v12, %v378_v13  ;;  %v340_v45 = vld [vmem:[%s1354_s28 + $0xf8] sm:$0xff]  ;;  %v1032_v46 = vcombine.low %v327_v34, %v331_v35  ;;  %v1034_v47 = vcombine.low %v328_v36, %v332_v37  ;;  %v1041_v48 = vcombine.high %v335_v42, %v339_v43  ;;  %v347_v51 = vld [vmem:[%s1354_s28 + $0x130] sm:$0xff] }
  0x53   : > { %v1043_v49 = vcombine.high %v336_v44, %v340_v45  ;;  %v351_v57 = vld [vmem:[%s1354_s28 + $0x150] sm:$0xff]  ;;  %v352_v59 = vld [vmem:[%s1354_s28 + $0x158] sm:$0xff] }
  0x54   : > { %765 = vmatpush1.bf16.msra.mxu0 %v1044_v52  ;;  %806 = vmatpush1.bf16.msra.mxu1 %v1046_v53  ;;  %v344_v52 = vld [vmem:[%s1354_s28 + $0x118] sm:$0xff]  ;;  %v355_v58 = vld [vmem:[%s1354_s28 + $0x170] sm:$0xff] }
  0x55   : > { %766 = vmatprep.subr.bf16.mxu0 %v1053_v54  ;;  %807 = vmatprep.subr.bf16.mxu1 %v1055_v55  ;;  %v348_v53 = vld [vmem:[%s1354_s28 + $0x138] sm:$0xff]  ;;  %v1040_v54 = vcombine.low %v335_v42, %v339_v43  ;;  %v1049_v55 = vcombine.high %v343_v50, %v347_v51  ;;  %v359_v1 = vld [vmem:[%s1354_s28 + $0x190] sm:$0xff] }
  0x56   : > { %v1051_v56 = vcombine.high %v344_v52, %v348_v53  ;;  %v363_v2 = vld [vmem:[%s1354_s28 + $0x1b0] sm:$0xff]  ;;  %v360_v3 = vld [vmem:[%s1354_s28 + $0x198] sm:$0xff] }
  0x57   : > { %v367_v11 = vld [vmem:[%s1354_s28 + $0x1d0] sm:$0xff]  ;;  %v368_v13 = vld [vmem:[%s1354_s28 + $0x1d8] sm:$0xff] }
  0x58   : > { %767 = vmatpush1.bf16.msra.mxu0 %v1052_v60  ;;  %808 = vmatpush1.bf16.msra.mxu1 %v1054_v61  ;;  %v356_v60 = vld [vmem:[%s1354_s28 + $0x178] sm:$0xff]  ;;  %v1048_v61 = vcombine.low %v343_v50, %v347_v51  ;;  %v371_v12 = vld [vmem:[%s1354_s28 + $0x1f0] sm:$0xff] }
  0x59   : > { %768 = vmatprep.subr.bf16.mxu0 %v1061_v62  ;;  %809 = vmatprep.subr.bf16.mxu1 %v1063_v63  ;;  %v1050_v62 = vcombine.low %v344_v52, %v348_v53  ;;  %v1057_v63 = vcombine.high %v351_v57, %v355_v58  ;;  %v1059_v0 = vcombine.high %v352_v59, %v356_v60  ;;  %v375_v19 = vld [vmem:[%s1354_s28 + $0x210] sm:$0xff]  ;;  %v376_v21 = vld [vmem:[%s1354_s28 + $0x218] sm:$0xff] }
  0x5a   : > { %v379_v20 = vld [vmem:[%s1354_s28 + $0x230] sm:$0xff] }
  0x5b   : > { %v1080_v27 = vcombine.low %v375_v19, %v379_v20 }
  0x5c   : > { %769 = vmatpush1.bf16.msra.mxu0 %v1060_v4  ;;  %810 = vmatpush1.bf16.msra.mxu1 %v1062_v5  ;;  %v364_v4 = vld [vmem:[%s1354_s28 + $0x1b8] sm:$0xff]  ;;  %v1056_v5 = vcombine.low %v351_v57, %v355_v58 }
  0x5d   : > { %770 = vmatprep.subr.bf16.mxu0 %v1069_v6  ;;  %811 = vmatprep.subr.bf16.mxu1 %v1071_v7  ;;  %v1058_v6 = vcombine.low %v352_v59, %v356_v60  ;;  %v1065_v7 = vcombine.high %v359_v1, %v363_v2  ;;  %v1067_v10 = vcombine.high %v360_v3, %v364_v4 }
  0x60   : > { %771 = vmatpush1.bf16.msra.mxu0 %v1068_v14  ;;  %812 = vmatpush1.bf16.msra.mxu1 %v1070_v15  ;;  %v372_v14 = vld [vmem:[%s1354_s28 + $0x1f8] sm:$0xff]  ;;  %v1064_v15 = vcombine.low %v359_v1, %v363_v2 }
  0x61   : > { %772 = vmatprep.subr.bf16.mxu0 %v1077_v16  ;;  %813 = vmatprep.subr.bf16.mxu1 %v1079_v17  ;;  %v1066_v16 = vcombine.low %v360_v3, %v364_v4  ;;  %v1073_v17 = vcombine.high %v367_v11, %v371_v12  ;;  %v1075_v18 = vcombine.high %v368_v13, %v372_v14 }
  0x64   : > { %773 = vmatpush1.bf16.msra.mxu0 %v1076_v22  ;;  %814 = vmatpush1.bf16.msra.mxu1 %v1078_v23  ;;  %v380_v22 = vld [vmem:[%s1354_s28 + $0x238] sm:$0xff]  ;;  %v1072_v23 = vcombine.low %v367_v11, %v371_v12 }
  0x65   : > { %838 = vmatprep.subr.bf16.mxu0 %v1017_v24  ;;  %879 = vmatprep.subr.bf16.mxu1 %v1019_v25  ;;  %v1074_v24 = vcombine.low %v368_v13, %v372_v14  ;;  %v1081_v25 = vcombine.high %v375_v19, %v379_v20  ;;  %v1083_v26 = vcombine.high %v376_v21, %v380_v22 }
  0x66   : > { %v1082_v28 = vcombine.low %v376_v21, %v380_v22 }
  0x67   : > { %789 = vmatmul.mubr.bf16.vlgmr.msra.gmra.mrb[0].mxu0 %v1344_v8  ;;  %830 = vmatmul.mubr.bf16.vlgmr.msra.gmra.mrb[0].mxu1 %v1344_v8 }
  0x68   : > { %839 = vmatpush1.bf16.msra.mxu0 %v1016_v30  ;;  %880 = vmatpush1.bf16.msra.mxu1 %v1018_v31 }
  0x69   : > { %840 = vmatprep.subr.bf16.mxu0 %v1025_v32  ;;  %881 = vmatprep.subr.bf16.mxu1 %v1027_v33 }
  0x6a   : > { %1086 = vmatprep.mubr.msk.bf16.mxu0 %vm752_vm0, %v1348_v9  ;;  %1087 = vmatprep.mubr.msk.bf16.mxu1 %vm752_vm0, %v1348_v9  ;;  %v1042_v9 = vcombine.low %v336_v44, %v340_v45 }
  0x6c   : > { %841 = vmatpush1.bf16.msra.mxu0 %v1024_v38  ;;  %882 = vmatpush1.bf16.msra.mxu1 %v1026_v39 }
  0x6d   : > { %842 = vmatprep.subr.bf16.mxu0 %v1033_v40  ;;  %883 = vmatprep.subr.bf16.mxu1 %v1035_v41 }
  0x70   : > { %843 = vmatpush1.bf16.msra.mxu0 %v1032_v46  ;;  %884 = vmatpush1.bf16.msra.mxu1 %v1034_v47 }
  0x71   : > { %844 = vmatprep.subr.bf16.mxu0 %v1041_v48  ;;  %885 = vmatprep.subr.bf16.mxu1 %v1043_v49 }
  0x74   : > { %845 = vmatpush1.bf16.msra.mxu0 %v1040_v54  ;;  %886 = vmatpush1.bf16.msra.mxu1 %v1042_v9 }
  0x75   : > { %846 = vmatprep.subr.bf16.mxu0 %v1049_v55  ;;  %887 = vmatprep.subr.bf16.mxu1 %v1051_v56 }
  0x78   : > { %847 = vmatpush1.bf16.msra.mxu0 %v1048_v61  ;;  %888 = vmatpush1.bf16.msra.mxu1 %v1050_v62 }
  0x79   : > { %848 = vmatprep.subr.bf16.mxu0 %v1057_v63  ;;  %889 = vmatprep.subr.bf16.mxu1 %v1059_v0 }
  0x7c   : > { %849 = vmatpush1.bf16.msra.mxu0 %v1056_v5  ;;  %890 = vmatpush1.bf16.msra.mxu1 %v1058_v6 }
  0x7d   : > { %850 = vmatprep.subr.bf16.mxu0 %v1065_v7  ;;  %891 = vmatprep.subr.bf16.mxu1 %v1067_v10 }
  0x80   : > { %851 = vmatpush1.bf16.msra.mxu0 %v1064_v15  ;;  %892 = vmatpush1.bf16.msra.mxu1 %v1066_v16 }
  0x81   : > { %852 = vmatprep.subr.bf16.mxu0 %v1073_v17  ;;  %893 = vmatprep.subr.bf16.mxu1 %v1075_v18 }
  0x84   : > { %853 = vmatpush1.bf16.msra.mxu0 %v1072_v23  ;;  %894 = vmatpush1.bf16.msra.mxu1 %v1074_v24 }
  0x85   : > { %854 = vmatprep.subr.bf16.mxu0 %v1081_v25  ;;  %895 = vmatprep.subr.bf16.mxu1 %v1083_v26 }
  0x88   : > { %855 = vmatpush1.bf16.msra.mxu0 %v1080_v27  ;;  %896 = vmatpush1.bf16.msra.mxu1 %v1082_v28 }
  0x8b   : > { %871 = vmatmul.mubr.bf16.vlgmr.msra.gmra.mrb[4].mxu0 %v1344_v8  ;;  %912 = vmatmul.mubr.bf16.vlgmr.msra.gmra.mrb[4].mxu1 %v1344_v8 }
 0x13a   : > { %v790_v29 = vpop.f32.mrb[0].mxu0  ;;  %v831_v30 = vpop.f32.mrb[0].mxu1 }
 0x13b   : > { %v792_v31 = vpop.f32.mrb[1].mxu0  ;;  %v833_v33 = vpop.f32.mrb[1].mxu1 }
 0x13c   : > { %v928_v32 = vcombine.low %v790_v29, %v792_v31  ;;  %v794_v34 = vpop.f32.mrb[2].mxu0  ;;  %v929_v35 = vcombine.low %v831_v30, %v833_v33  ;;  %v835_v36 = vpop.f32.mrb[2].mxu1 }
 0x13d   : > { %v795_v37 = vpop.f32.mrb[3].mxu0  ;;  %v836_v8 = vpop.f32.mrb[3].mxu1 }
 0x13e   : > { %936 = vst [vmem:[%s306_s5] sm:$0xff] %v928_v32  ;;  %937 = vst [vmem:[%s306_s5 + $0x8] sm:$0xff] %v929_v35 }
 0x15e   : > { %v872_v38 = vpop.f32.mrb[4].mxu0  ;;  %v913_v39 = vpop.f32.mrb[4].mxu1 }
 0x15f   : > { %v874_v40 = vpop.f32.mrb[5].mxu0  ;;  %v915_v42 = vpop.f32.mrb[5].mxu1 }
 0x160   : > { %v930_v41 = vcombine.low %v872_v38, %v874_v40  ;;  %v876_v43 = vpop.f32.mrb[6].mxu0  ;;  %v931_v44 = vcombine.low %v913_v39, %v915_v42  ;;  %v917_v45 = vpop.f32.mrb[6].mxu1 }
 0x161   : > { %v877_v46 = vpop.f32.mrb[7].mxu0  ;;  %v918_v47 = vpop.f32.mrb[7].mxu1 }
 0x162   : > { %938 = vst [vmem:[%s306_s5 + $0x10] sm:$0xff] %v930_v41  ;;  %939 = vst [vmem:[%s306_s5 + $0x18] sm:$0xff] %v931_v44 }
 0x163 PF: > { %p9_p9 = scmp.ge.s32.totalorder %s1173_s13, 10   ;;  %s1454_s9 = smov %s1135_s10 }
 0x164   : > { %s1455_s10 = smov %s1182_s16  ;;  %s1456_s11 = smov %s1173_s13 }
 0x165   :  { %11 = sbr.rel (!%p9_p9) target bundleno = 2 (0x2), region = 86 }

// kernel: turbnetg_forward.9
= control target key start
LH: loop header
LB: loop body
LE: loop exit
PB: predicated region body
PF: predicated region fallthrough
CT: control target
= control target key end

     0   :  { %s880_s9 = smov 0   ;;  %s882_s10 = smov 0   ;;  %s1117_s0 = inlined_call_operand.vmem [shape: bf16[12,72], index: 0, kind: input, shape index: {}]   ;;  %s1118_s1 = inlined_call_operand.vmem [shape: bf16[72,8192], index: 1, kind: input, shape index: {}]   ;;  %s1119_s2 = inlined_call_operand.vmem [shape: f32[12,8192], index: 2, kind: output, shape index: {}]  }
   0x1   :  { %s884_s11 = smov 0  }
   0x2 LB: > { %s788_s12 = sadd.s32 4294967295, %s862_s11   ;;  %s897_s13 = sadd.s32 1, %s862_s11   ;;  %s862_s11 = sphi %s884_s11, %s1123_s11   ;;  %s858_s10 = sphi %s882_s10, %s1122_s10   ;;  %s854_s9 = sphi %s880_s9, %s1121_s9  }
   0x3   : > { %s37_s14 = ssub.s32 %s862_s11, %s897_s13  ;;  %s40_s15 = sadd.s32 1, %s858_s10 }
   0x4   : > { %p38_p0 = scmp.eq.s32.totalorder %s37_s14, 0  ;;  %p47_p1 = scmp.ne.s32.totalorder %s858_s10, %s854_s9 }
   0x5   : > { %p48_p2 = scmp.eq.s32.totalorder %s862_s11, 0  ;;  %p77_p3 = scmp.eq.s32.totalorder %s788_s12, 7 }
   0x6   : > { %s908_s16 = scalar_select %p38_p0, %s858_s10, %s40_s15  }
   0x7   : > { %p49_p4 = por %p48_p2, %p47_p1  ;;  %p910_p5 = por %p77_p3, %p47_p1 }
   0x8   : > { %p791_p6 = scmp.ge.s32.totalorder %s862_s11, 8 }
   0xa   : > { %102 = sbr.rel (%p791_p6) target bundleno = 40 (0x28), region = 20 }
  0x11   : > { %105 = sbr.rel (!%p49_p4) target bundleno = 40 (0x28), region = 24  ;;  %s107_s18 = sand.u32 (%p49_p4), 1, %s858_s10  }
  0x12   : > { %s810_s19 = sshll.u32 (%p49_p4), %s862_s11, 5  ;;  %s812_s20 = smul.u32 (%p49_p4), 288, %s107_s18 }
  0x13   : > { %s920_s23 = scalar_lea.vmem (%p49_p4), %s1118_s1, %s810_s19 }
  0x14   : > { %v125_v0 = vld [vmem:[%s920_s23] sm:$0xff] (%p49_p4)  ;;  %v127_v1 = vld [vmem:[%s920_s23 + $0x8] sm:$0xff] (%p49_p4)  ;;  %v129_v2 = vld [vmem:[%s920_s23 + $0x10] sm:$0xff] (%p49_p4)  ;;  %s928_s24 = scalar_lea.vmem (%p49_p4), [#allocation2], %s812_s20 }
  0x15   : > { %v131_v3 = vld [vmem:[%s920_s23 + $0x18] sm:$0xff] (%p49_p4)  ;;  %v133_v4 = vld [vmem:[%s920_s23 + $0x100] sm:$0xff] (%p49_p4)  ;;  %v135_v5 = vld [vmem:[%s920_s23 + $0x108] sm:$0xff] (%p49_p4)  ;;  %126 = vst [vmem:[%s928_s24] sm:$0xff] (%p49_p4), %v125_v0 }
  0x16   : > { %128 = vst [vmem:[%s928_s24 + $0x8] sm:$0xff] (%p49_p4), %v127_v1  ;;  %130 = vst [vmem:[%s928_s24 + $0x10] sm:$0xff] (%p49_p4), %v129_v2  ;;  %v137_v6 = vld [vmem:[%s920_s23 + $0x110] sm:$0xff] (%p49_p4)  ;;  %v139_v7 = vld [vmem:[%s920_s23 + $0x118] sm:$0xff] (%p49_p4) }
  0x17   : > { %132 = vst [vmem:[%s928_s24 + $0x18] sm:$0xff] (%p49_p4), %v131_v3  ;;  %134 = vst [vmem:[%s928_s24 + $0x20] sm:$0xff] (%p49_p4), %v133_v4  ;;  %v141_v8 = vld [vmem:[%s920_s23 + $0x200] sm:$0xff] (%p49_p4)  ;;  %v143_v9 = vld [vmem:[%s920_s23 + $0x208] sm:$0xff] (%p49_p4) }
  0x18   : > { %136 = vst [vmem:[%s928_s24 + $0x28] sm:$0xff] %v135_v5  ;;  %138 = vst [vmem:[%s928_s24 + $0x30] sm:$0xff] %v137_v6  ;;  %v145_v10 = vld [vmem:[%s920_s23 + $0x210] sm:$0xff]  ;;  %v147_v11 = vld [vmem:[%s920_s23 + $0x218] sm:$0xff] }
  0x19   : > { %140 = vst [vmem:[%s928_s24 + $0x38] sm:$0xff] %v139_v7  ;;  %142 = vst [vmem:[%s928_s24 + $0x40] sm:$0xff] %v141_v8  ;;  %v149_v12 = vld [vmem:[%s920_s23 + $0x300] sm:$0xff]  ;;  %v151_v13 = vld [vmem:[%s920_s23 + $0x308] sm:$0xff] }
  0x1a   : > { %144 = vst [vmem:[%s928_s24 + $0x48] sm:$0xff] %v143_v9  ;;  %146 = vst [vmem:[%s928_s24 + $0x50] sm:$0xff] %v145_v10  ;;  %v153_v14 = vld [vmem:[%s920_s23 + $0x310] sm:$0xff]  ;;  %v155_v15 = vld [vmem:[%s920_s23 + $0x318] sm:$0xff] }
  0x1b   : > { %148 = vst [vmem:[%s928_s24 + $0x58] sm:$0xff] %v147_v11  ;;  %150 = vst [vmem:[%s928_s24 + $0x60] sm:$0xff] %v149_v12  ;;  %v157_v16 = vld [vmem:[%s920_s23 + $0x400] sm:$0xff]  ;;  %v159_v17 = vld [vmem:[%s920_s23 + $0x408] sm:$0xff] }
  0x1c   : > { %152 = vst [vmem:[%s928_s24 + $0x68] sm:$0xff] %v151_v13  ;;  %154 = vst [vmem:[%s928_s24 + $0x70] sm:$0xff] %v153_v14  ;;  %v161_v18 = vld [vmem:[%s920_s23 + $0x410] sm:$0xff]  ;;  %v163_v19 = vld [vmem:[%s920_s23 + $0x418] sm:$0xff] }
  0x1d   : > { %156 = vst [vmem:[%s928_s24 + $0x78] sm:$0xff] %v155_v15  ;;  %158 = vst [vmem:[%s928_s24 + $0x80] sm:$0xff] %v157_v16  ;;  %v165_v20 = vld [vmem:[%s920_s23 + $0x500] sm:$0xff]  ;;  %v167_v21 = vld [vmem:[%s920_s23 + $0x508] sm:$0xff] }
  0x1e   : > { %160 = vst [vmem:[%s928_s24 + $0x88] sm:$0xff] %v159_v17  ;;  %162 = vst [vmem:[%s928_s24 + $0x90] sm:$0xff] %v161_v18  ;;  %v169_v22 = vld [vmem:[%s920_s23 + $0x510] sm:$0xff]  ;;  %v171_v23 = vld [vmem:[%s920_s23 + $0x518] sm:$0xff] }
  0x1f   : > { %164 = vst [vmem:[%s928_s24 + $0x98] sm:$0xff] %v163_v19  ;;  %166 = vst [vmem:[%s928_s24 + $0xa0] sm:$0xff] %v165_v20  ;;  %v173_v24 = vld [vmem:[%s920_s23 + $0x600] sm:$0xff]  ;;  %v175_v25 = vld [vmem:[%s920_s23 + $0x608] sm:$0xff] }
  0x20   : > { %168 = vst [vmem:[%s928_s24 + $0xa8] sm:$0xff] %v167_v21  ;;  %170 = vst [vmem:[%s928_s24 + $0xb0] sm:$0xff] %v169_v22  ;;  %v177_v26 = vld [vmem:[%s920_s23 + $0x610] sm:$0xff]  ;;  %v179_v27 = vld [vmem:[%s920_s23 + $0x618] sm:$0xff] }
  0x21   : > { %172 = vst [vmem:[%s928_s24 + $0xb8] sm:$0xff] %v171_v23  ;;  %174 = vst [vmem:[%s928_s24 + $0xc0] sm:$0xff] %v173_v24  ;;  %v181_v28 = vld [vmem:[%s920_s23 + $0x700] sm:$0xff]  ;;  %v183_v29 = vld [vmem:[%s920_s23 + $0x708] sm:$0xff] }
  0x22   : > { %176 = vst [vmem:[%s928_s24 + $0xc8] sm:$0xff] %v175_v25  ;;  %178 = vst [vmem:[%s928_s24 + $0xd0] sm:$0xff] %v177_v26  ;;  %v185_v30 = vld [vmem:[%s920_s23 + $0x710] sm:$0xff]  ;;  %v187_v31 = vld [vmem:[%s920_s23 + $0x718] sm:$0xff] }
  0x23   : > { %180 = vst [vmem:[%s928_s24 + $0xd8] sm:$0xff] %v179_v27  ;;  %182 = vst [vmem:[%s928_s24 + $0xe0] sm:$0xff] %v181_v28  ;;  %v189_v32 = vld [vmem:[%s920_s23 + $0x800] sm:$0xff]  ;;  %v191_v33 = vld [vmem:[%s920_s23 + $0x808] sm:$0xff] }
  0x24   : > { %184 = vst [vmem:[%s928_s24 + $0xe8] sm:$0xff] %v183_v29  ;;  %186 = vst [vmem:[%s928_s24 + $0xf0] sm:$0xff] %v185_v30  ;;  %v193_v34 = vld [vmem:[%s920_s23 + $0x810] sm:$0xff]  ;;  %v195_v35 = vld [vmem:[%s920_s23 + $0x818] sm:$0xff] }
  0x25   : > { %188 = vst [vmem:[%s928_s24 + $0xf8] sm:$0xff] %v187_v31  ;;  %190 = vst [vmem:[%s928_s24 + $0x100] sm:$0xff] %v189_v32 }
  0x26   : > { %192 = vst [vmem:[%s928_s24 + $0x108] sm:$0xff] %v191_v33  ;;  %194 = vst [vmem:[%s928_s24 + $0x110] sm:$0xff] %v193_v34 }
  0x27   : > { %196 = vst [vmem:[%s928_s24 + $0x118] sm:$0xff] %v195_v35 }
  0x28 PF: > { %p794_p7 = scmp.ge.s32.totalorder %s862_s11, 1  ;;  %p201_p8 = scmp.lt.s32.totalorder %s862_s11, 9 }
  0x2a   : > { %p202_p9 = pnand %p794_p7, %p201_p8 }
  0x2b   : > { %s208_s25 = sand.u32 (!%p202_p9), 1, %s854_s9   ;;  %v864_v36 = vmov (!%p202_p9), 0   ;;  %vm462_vm0 = vcmask (!%p202_p9), 1043456   ;;  %vm458_vm1 = vcmask (!%p202_p9), 588800  }
  0x2c   : > { %205 = sbr.rel (%p202_p9) target bundleno = 328 (0x148), region = 47  ;;  %519 = vmatprep.mubr.bf16.mxu0 (!%p202_p9), %v864_v36  ;;  %562 = vmatprep.mubr.bf16.mxu1 (!%p202_p9), %v864_v36  ;;  %s795_s30 = sshll.u32 (!%p202_p9), %s208_s25, 7 }
  0x2d   : > { %s813_s26 = smul.u32 (!%p202_p9), 288, %s208_s25  ;;  %s1066_s3 = scalar_lea.vmem (!%p202_p9), [#allocation3], %s795_s30 }
  0x2f   : > { %s1003_s27 = scalar_lea.vmem (!%p202_p9), [#allocation2], %s813_s26 }
  0x30   : > { %v231_v37 = vld [vmem:[%s1003_s27] sm:$0xff] (!%p202_p9)  ;;  %v232_v39 = vld [vmem:[%s1003_s27 + $0x8] sm:$0xff] (!%p202_p9) }
  0x31   : > { %v235_v38 = vld [vmem:[%s1003_s27 + $0x20] sm:$0xff] (!%p202_p9)  ;;  %v268_v40 = vunpack.c.h.bf16 (!%p202_p9), %v231_v37  ;;  %v236_v42 = vld [vmem:[%s1003_s27 + $0x28] sm:$0xff] (!%p202_p9)  ;;  %v270_v43 = vunpack.c.h.bf16 (!%p202_p9), %v232_v39  ;;  %v267_v44 = vunpack.c.l.bf16 (!%p202_p9), %v231_v37  ;;  %v269_v47 = vunpack.c.l.bf16 (!%p202_p9), %v232_v39 }
  0x32   : > { %v276_v41 = vunpack.c.h.bf16 (!%p202_p9), %v235_v38  ;;  %v278_v45 = vunpack.c.h.bf16 (!%p202_p9), %v236_v42  ;;  %v275_v46 = vunpack.c.l.bf16 (!%p202_p9), %v235_v38  ;;  %v277_v48 = vunpack.c.l.bf16 (!%p202_p9), %v236_v42  ;;  %v239_v49 = vld [vmem:[%s1003_s27 + $0x40] sm:$0xff] (!%p202_p9)  ;;  %v240_v51 = vld [vmem:[%s1003_s27 + $0x48] sm:$0xff] (!%p202_p9) }
  0x33   : > { %v243_v50 = vld [vmem:[%s1003_s27 + $0x60] sm:$0xff]  ;;  %v340_v52 = vmax.f32 %v268_v40, 0.0  ;;  %v342_v54 = vmax.f32 %v270_v43, 0.0  ;;  %v339_v55 = vmax.f32 %v267_v44, 0.0  ;;  %v244_v56 = vld [vmem:[%s1003_s27 + $0x68] sm:$0xff]  ;;  %v341_v59 = vmax.f32 %v269_v47, 0.0 }
  0x34   : > { %v348_v53 = vmax.f32 %v276_v41, 0.0  ;;  %v350_v57 = vmax.f32 %v278_v45, 0.0  ;;  %v347_v58 = vmax.f32 %v275_v46, 0.0  ;;  %v349_v60 = vmax.f32 %v277_v48, 0.0  ;;  %v247_v5 = vld [vmem:[%s1003_s27 + $0x80] sm:$0xff]  ;;  %v248_v15 = vld [vmem:[%s1003_s27 + $0x88] sm:$0xff] }
  0x35   : > { %v284_v62 = vunpack.c.h.bf16 %v239_v49  ;;  %v292_v63 = vunpack.c.h.bf16 %v243_v50  ;;  %v286_v0 = vunpack.c.h.bf16 %v240_v51  ;;  %v294_v4 = vunpack.c.h.bf16 %v244_v56  ;;  %v251_v6 = vld [vmem:[%s1003_s27 + $0xa0] sm:$0xff]  ;;  %v252_v16 = vld [vmem:[%s1003_s27 + $0xa8] sm:$0xff]  ;;  %s811_s4 = sshll.u32 (%p910_p5), %s788_s12, 6 }
  0x36   : > { %v414_v61 = vpack.c.bf16 %v348_v53, %v340_v52  ;;  %v416_v1 = vpack.c.bf16 %v350_v57, %v342_v54  ;;  %v413_v2 = vpack.c.bf16 %v347_v58, %v339_v55  ;;  %v415_v3 = vpack.c.bf16 %v349_v60, %v341_v59  ;;  %v255_v29 = vld [vmem:[%s1003_s27 + $0xc0] sm:$0xff]  ;;  %v256_v35 = vld [vmem:[%s1003_s27 + $0xc8] sm:$0xff]  ;;  %s684_s7 = scalar_lea.vmem (%p910_p5), %s1119_s2, %s811_s4 }
  0x37   : > { %v356_v7 = vmax.f32 %v284_v62, 0.0  ;;  %v364_v8 = vmax.f32 %v292_v63, 0.0  ;;  %v358_v9 = vmax.f32 %v286_v0, 0.0  ;;  %v283_v10 = vunpack.c.l.bf16 %v239_v49  ;;  %v259_v34 = vld [vmem:[%s1003_s27 + $0xe0] sm:$0xff]  ;;  %v260_v41 = vld [vmem:[%s1003_s27 + $0xe8] sm:$0xff] }
  0x38   : > { %487 = vmatprep.subr.bf16.mxu0 %v414_v61  ;;  %530 = vmatprep.subr.bf16.mxu1 %v416_v1  ;;  %v366_v11 = vmax.f32 %v294_v4, 0.0  ;;  %v291_v12 = vunpack.c.l.bf16 %v243_v50  ;;  %v285_v13 = vunpack.c.l.bf16 %v240_v51  ;;  %v293_v14 = vunpack.c.l.bf16 %v244_v56  ;;  %v263_v54 = vld [vmem:[%s1003_s27 + $0x100] sm:$0xff]  ;;  %v264_v59 = vld [vmem:[%s1003_s27 + $0x108] sm:$0xff]  ;;  %v233_v4 = vld [vmem:[%s1003_s27 + $0x10] sm:$0xff] }
  0x39   : > { %488 = vmatpush1.bf16.msra.mxu0 %v413_v2  ;;  %531 = vmatpush1.bf16.msra.mxu1 %v415_v3  ;;  %v422_v17 = vpack.c.bf16 %v364_v8, %v356_v7  ;;  %v355_v18 = vmax.f32 %v283_v10, 0.0  ;;  %v300_v19 = vunpack.c.h.bf16 %v247_v5  ;;  %v308_v20 = vunpack.c.h.bf16 %v251_v6 }
  0x3a   : > { %v424_v21 = vpack.c.bf16 %v366_v11, %v358_v9  ;;  %v363_v22 = vmax.f32 %v291_v12, 0.0  ;;  %v357_v23 = vmax.f32 %v285_v13, 0.0  ;;  %v365_v24 = vmax.f32 %v293_v14, 0.0  ;;  %v237_v9 = vld [vmem:[%s1003_s27 + $0x30] sm:$0xff] }
  0x3b   : > { %489 = vmatprep.subr.bf16.mxu0 %v422_v17  ;;  %v372_v25 = vmax.f32 %v300_v19, 0.0  ;;  %v380_v26 = vmax.f32 %v308_v20, 0.0  ;;  %v302_v27 = vunpack.c.h.bf16 %v248_v15  ;;  %v310_v28 = vunpack.c.h.bf16 %v252_v16 }
  0x3c   : > { %532 = vmatprep.subr.bf16.mxu1 %v424_v21  ;;  %v421_v30 = vpack.c.bf16 %v363_v22, %v355_v18  ;;  %v423_v31 = vpack.c.bf16 %v365_v24, %v357_v23  ;;  %v299_v32 = vunpack.c.l.bf16 %v247_v5  ;;  %v307_v33 = vunpack.c.l.bf16 %v251_v6  ;;  %v234_v18 = vld [vmem:[%s1003_s27 + $0x18] sm:$0xff] }
  0x3d   : > { %v430_v37 = vpack.c.bf16 %v380_v26, %v372_v25  ;;  %v374_v38 = vmax.f32 %v302_v27, 0.0  ;;  %v382_v39 = vmax.f32 %v310_v28, 0.0  ;;  %v301_v40 = vunpack.c.l.bf16 %v248_v15  ;;  %v238_v23 = vld [vmem:[%s1003_s27 + $0x38] sm:$0xff] }
  0x3e   : > { %490 = vmatpush1.bf16.msra.mxu0 %v421_v30  ;;  %533 = vmatpush1.bf16.msra.mxu1 %v423_v31  ;;  %v371_v42 = vmax.f32 %v299_v32, 0.0  ;;  %v379_v43 = vmax.f32 %v307_v33, 0.0  ;;  %v309_v44 = vunpack.c.l.bf16 %v252_v16  ;;  %v316_v45 = vunpack.c.h.bf16 %v255_v29 }
  0x3f   : > { %491 = vmatprep.subr.bf16.mxu0 %v430_v37  ;;  %v432_v46 = vpack.c.bf16 %v382_v39, %v374_v38  ;;  %v373_v47 = vmax.f32 %v301_v40, 0.0  ;;  %v324_v48 = vunpack.c.h.bf16 %v259_v34  ;;  %v318_v49 = vunpack.c.h.bf16 %v256_v35  ;;  %v241_v37 = vld [vmem:[%s1003_s27 + $0x50] sm:$0xff] }
  0x40   : > { %v429_v50 = vpack.c.bf16 %v379_v43, %v371_v42  ;;  %v381_v51 = vmax.f32 %v309_v44, 0.0  ;;  %v388_v52 = vmax.f32 %v316_v45, 0.0  ;;  %v326_v53 = vunpack.c.h.bf16 %v260_v41  ;;  %v245_v38 = vld [vmem:[%s1003_s27 + $0x70] sm:$0xff]  ;;  %v242_v44 = vld [vmem:[%s1003_s27 + $0x58] sm:$0xff] }
  0x41   : > { %534 = vmatprep.subr.bf16.mxu1 %v432_v46  ;;  %v396_v55 = vmax.f32 %v324_v48, 0.0  ;;  %v390_v56 = vmax.f32 %v318_v49, 0.0  ;;  %v315_v57 = vunpack.c.l.bf16 %v255_v29  ;;  %v323_v58 = vunpack.c.l.bf16 %v259_v34 }
  0x42   : > { %492 = vmatpush1.bf16.msra.mxu0 %v429_v50  ;;  %v431_v60 = vpack.c.bf16 %v381_v51, %v373_v47  ;;  %v398_v61 = vmax.f32 %v326_v53, 0.0  ;;  %v317_v62 = vunpack.c.l.bf16 %v256_v35  ;;  %v325_v63 = vunpack.c.l.bf16 %v260_v41  ;;  %v1036_v41 = vld [vmem:[%s1117_s0] sm:$0x3f]   ;;  %v246_v53 = vld [vmem:[%s1003_s27 + $0x78] sm:$0xff] }
  0x43   : > { %v438_v0 = vpack.c.bf16 %v396_v55, %v388_v52  ;;  %v387_v1 = vmax.f32 %v315_v57, 0.0  ;;  %v395_v2 = vmax.f32 %v323_v58, 0.0  ;;  %v332_v3 = vunpack.c.h.bf16 %v263_v54  ;;  %v249_v58 = vld [vmem:[%s1003_s27 + $0x90] sm:$0xff] }
  0x44   : > { %535 = vmatpush1.bf16.msra.mxu1 %v431_v60  ;;  %v440_v5 = vpack.c.bf16 %v398_v61, %v390_v56  ;;  %v389_v6 = vmax.f32 %v317_v62, 0.0  ;;  %v397_v7 = vmax.f32 %v325_v63, 0.0  ;;  %v334_v8 = vunpack.c.h.bf16 %v264_v59  ;;  %v253_v63 = vld [vmem:[%s1003_s27 + $0xb0] sm:$0xff] }
  0x45   : > { %493 = vmatprep.subr.bf16.mxu0 %v438_v0  ;;  %v437_v10 = vpack.c.bf16 %v395_v2, %v387_v1  ;;  %v404_v11 = vmax.f32 %v332_v3, 0.0  ;;  %v331_v12 = vunpack.c.l.bf16 %v263_v54  ;;  %v333_v13 = vunpack.c.l.bf16 %v264_v59 }
  0x46   : > { %536 = vmatprep.subr.bf16.mxu1 %v440_v5  ;;  %v439_v14 = vpack.c.bf16 %v397_v7, %v389_v6  ;;  %v406_v15 = vmax.f32 %v334_v8, 0.0  ;;  %v271_v16 = vunpack.c.l.bf16 %v233_v4  ;;  %v272_v17 = vunpack.c.h.bf16 %v233_v4  ;;  %v250_v4 = vld [vmem:[%s1003_s27 + $0x98] sm:$0xff] }
  0x47   : > { %494 = vmatpush1.bf16.msra.mxu0 %v437_v10  ;;  %v446_v19 = vpack.c.bf16 %v404_v11, %v404_v11  ;;  %v403_v20 = vmax.f32 %v331_v12, 0.0  ;;  %v405_v21 = vmax.f32 %v333_v13, 0.0  ;;  %v279_v22 = vunpack.c.l.bf16 %v237_v9  ;;  %v254_v13 = vld [vmem:[%s1003_s27 + $0xb8] sm:$0xff] }
  0x48   : > { %537 = vmatpush1.bf16.msra.mxu1 %v439_v14  ;;  %v448_v24 = vpack.c.bf16 %v406_v15, %v406_v15  ;;  %v280_v25 = vunpack.c.h.bf16 %v237_v9  ;;  %v343_v26 = vmax.f32 %v271_v16, 0.0  ;;  %v344_v27 = vmax.f32 %v272_v17, 0.0 }
  0x49   : > { %797 = vmatprep.subr.msk.bf16.mxu0 %vm462_vm0, %v446_v19  ;;  %v445_v28 = vpack.c.bf16 %v403_v20, %v403_v20  ;;  %v447_v29 = vpack.c.bf16 %v405_v21, %v405_v21  ;;  %v351_v30 = vmax.f32 %v279_v22, 0.0  ;;  %v273_v31 = vunpack.c.l.bf16 %v234_v18 }
  0x4a   : > { %799 = vmatprep.subr.msk.bf16.mxu1 %vm462_vm0, %v448_v24  ;;  %v352_v32 = vmax.f32 %v280_v25, 0.0  ;;  %v274_v33 = vunpack.c.h.bf16 %v234_v18  ;;  %v281_v34 = vunpack.c.l.bf16 %v238_v23  ;;  %v282_v35 = vunpack.c.h.bf16 %v238_v23  ;;  %v257_v18 = vld [vmem:[%s1003_s27 + $0xd0] sm:$0xff] }
  0x4b   : > { %v464_v39 = vsel %vm462_vm0, %v445_v28, 0  ;;  %v470_v40 = vsel %vm462_vm0, %v447_v29, 0  ;;  %v345_v42 = vmax.f32 %v273_v31, 0.0  ;;  %v417_v43 = vpack.c.bf16 %v351_v30, %v343_v26  ;;  %v261_v23 = vld [vmem:[%s1003_s27 + $0xf0] sm:$0xff]  ;;  %v258_v28 = vld [vmem:[%s1003_s27 + $0xd8] sm:$0xff] }
  0x4c   : > { %496 = vmatpush1.bf16.msra.mxu0 %v464_v39  ;;  %539 = vmatpush1.bf16.msra.mxu1 %v470_v40  ;;  %v418_v45 = vpack.c.bf16 %v352_v32, %v344_v27  ;;  %v346_v46 = vmax.f32 %v274_v33, 0.0  ;;  %v353_v47 = vmax.f32 %v281_v34, 0.0  ;;  %v354_v48 = vmax.f32 %v282_v35, 0.0 }
  0x4d   : > { %v287_v49 = vunpack.c.l.bf16 %v241_v37  ;;  %v288_v50 = vunpack.c.h.bf16 %v241_v37  ;;  %v295_v51 = vunpack.c.l.bf16 %v245_v38  ;;  %v296_v52 = vunpack.c.h.bf16 %v245_v38  ;;  %v262_v37 = vld [vmem:[%s1003_s27 + $0xf8] sm:$0xff] }
  0x4e   : > { %573 = vmatprep.subr.bf16.mxu0 %v418_v45  ;;  %v420_v54 = vpack.c.bf16 %v354_v48, %v346_v46  ;;  %v419_v55 = vpack.c.bf16 %v353_v47, %v345_v42  ;;  %v289_v56 = vunpack.c.l.bf16 %v242_v44  ;;  %v290_v57 = vunpack.c.h.bf16 %v242_v44  ;;  %v266_v44 = vld [vmem:[%s1003_s27 + $0x118] sm:$0xff] }
  0x4f   : > { %798 = vmatmul.mubr.msk.bf16.vlgmr.msra.gmra.mrb[0].mxu0 %vm458_vm1, %v1036_v41  ;;  %800 = vmatmul.mubr.msk.bf16.vlgmr.msra.gmra.mrb[0].mxu1 %vm458_vm1, %v1036_v41  ;;  %v359_v59 = vmax.f32 %v287_v49, 0.0  ;;  %v360_v60 = vmax.f32 %v288_v50, 0.0  ;;  %v367_v61 = vmax.f32 %v295_v51, 0.0  ;;  %v368_v62 = vmax.f32 %v296_v52, 0.0 }
  0x50   : > { %616 = vmatprep.subr.bf16.mxu1 %v420_v54  ;;  %574 = vmatpush1.bf16.msra.mxu0 %v417_v43  ;;  %v297_v0 = vunpack.c.l.bf16 %v246_v53  ;;  %v298_v1 = vunpack.c.h.bf16 %v246_v53  ;;  %v361_v2 = vmax.f32 %v289_v56, 0.0  ;;  %v362_v3 = vmax.f32 %v290_v57, 0.0  ;;  %v265_v43 = vld [vmem:[%s1003_s27 + $0x110] sm:$0xff] }
  0x51   : > { %617 = vmatpush1.bf16.msra.mxu1 %v419_v55  ;;  %v426_v5 = vpack.c.bf16 %v368_v62, %v360_v60  ;;  %v425_v6 = vpack.c.bf16 %v367_v61, %v359_v59  ;;  %v303_v7 = vunpack.c.l.bf16 %v249_v58  ;;  %v304_v8 = vunpack.c.h.bf16 %v249_v58  ;;  %605 = vmatprep.mubr.bf16.mxu0 %v864_v36 }
  0x52   : > { %v369_v9 = vmax.f32 %v297_v0, 0.0  ;;  %v370_v10 = vmax.f32 %v298_v1, 0.0  ;;  %v311_v11 = vunpack.c.l.bf16 %v253_v63  ;;  %v312_v12 = vunpack.c.h.bf16 %v253_v63  ;;  %648 = vmatprep.mubr.bf16.mxu1 %v864_v36 }
  0x53   : > { %575 = vmatprep.subr.bf16.mxu0 %v426_v5  ;;  %v375_v14 = vmax.f32 %v303_v7, 0.0  ;;  %v376_v15 = vmax.f32 %v304_v8, 0.0  ;;  %v305_v16 = vunpack.c.l.bf16 %v250_v4  ;;  %v306_v17 = vunpack.c.h.bf16 %v250_v4 }
  0x54   : > { %v428_v19 = vpack.c.bf16 %v370_v10, %v362_v3  ;;  %576 = vmatpush1.bf16.msra.mxu0 %v425_v6  ;;  %v427_v20 = vpack.c.bf16 %v369_v9, %v361_v2  ;;  %v383_v21 = vmax.f32 %v311_v11, 0.0  ;;  %v384_v22 = vmax.f32 %v312_v12, 0.0 }
  0x55   : > { %v313_v24 = vunpack.c.l.bf16 %v254_v13  ;;  %v314_v25 = vunpack.c.h.bf16 %v254_v13  ;;  %v377_v26 = vmax.f32 %v305_v16, 0.0  ;;  %v378_v27 = vmax.f32 %v306_v17, 0.0 }
  0x56   : > { %618 = vmatprep.subr.bf16.mxu1 %v428_v19  ;;  %v434_v36 = vpack.c.bf16 %v384_v22, %v376_v15  ;;  %v433_v29 = vpack.c.bf16 %v383_v21, %v375_v14  ;;  %v319_v30 = vunpack.c.l.bf16 %v257_v18  ;;  %v320_v31 = vunpack.c.h.bf16 %v257_v18 }
  0x57   : > { %619 = vmatpush1.bf16.msra.mxu1 %v427_v20  ;;  %v385_v32 = vmax.f32 %v313_v24, 0.0  ;;  %v386_v33 = vmax.f32 %v314_v25, 0.0  ;;  %v327_v34 = vunpack.c.l.bf16 %v261_v23  ;;  %v328_v35 = vunpack.c.h.bf16 %v261_v23 }
  0x58   : > { %577 = vmatprep.subr.bf16.mxu0 %v434_v36  ;;  %v391_v38 = vmax.f32 %v319_v30, 0.0  ;;  %v392_v39 = vmax.f32 %v320_v31, 0.0  ;;  %v321_v40 = vunpack.c.l.bf16 %v258_v28  ;;  %v322_v42 = vunpack.c.h.bf16 %v258_v28 }
  0x59   : > { %v436_v45 = vpack.c.bf16 %v386_v33, %v378_v27  ;;  %578 = vmatpush1.bf16.msra.mxu0 %v433_v29  ;;  %v435_v46 = vpack.c.bf16 %v385_v32, %v377_v26  ;;  %v399_v47 = vmax.f32 %v327_v34, 0.0  ;;  %v400_v48 = vmax.f32 %v328_v35, 0.0 }
  0x5a   : > { %v329_v49 = vunpack.c.l.bf16 %v262_v37  ;;  %v330_v50 = vunpack.c.h.bf16 %v262_v37  ;;  %v393_v51 = vmax.f32 %v321_v40, 0.0  ;;  %v394_v52 = vmax.f32 %v322_v42, 0.0 }
  0x5b   : > { %620 = vmatprep.subr.bf16.mxu1 %v436_v45  ;;  %v442_v53 = vpack.c.bf16 %v400_v48, %v392_v39  ;;  %v441_v54 = vpack.c.bf16 %v399_v47, %v391_v38  ;;  %v336_v55 = vunpack.c.h.bf16 %v265_v43  ;;  %v338_v56 = vunpack.c.h.bf16 %v266_v44 }
  0x5c   : > { %621 = vmatpush1.bf16.msra.mxu1 %v435_v46  ;;  %v401_v57 = vmax.f32 %v329_v49, 0.0  ;;  %v402_v58 = vmax.f32 %v330_v50, 0.0  ;;  %v335_v59 = vunpack.c.l.bf16 %v265_v43  ;;  %v337_v60 = vunpack.c.l.bf16 %v266_v44 }
  0x5d   : > { %579 = vmatprep.subr.bf16.mxu0 %v442_v53  ;;  %v408_v61 = vmax.f32 %v336_v55, 0.0  ;;  %v410_v62 = vmax.f32 %v338_v56, 0.0 }
  0x5e   : > { %v444_v63 = vpack.c.bf16 %v402_v58, %v394_v52  ;;  %580 = vmatpush1.bf16.msra.mxu0 %v441_v54  ;;  %v443_v0 = vpack.c.bf16 %v401_v57, %v393_v51  ;;  %v407_v1 = vmax.f32 %v335_v59, 0.0  ;;  %v409_v2 = vmax.f32 %v337_v60, 0.0 }
  0x5f   : > { %v450_v3 = vpack.c.bf16 %v408_v61, %v408_v61  ;;  %v452_v4 = vpack.c.bf16 %v410_v62, %v410_v62 }
  0x60   : > { %622 = vmatprep.subr.bf16.mxu1 %v444_v63  ;;  %v449_v5 = vpack.c.bf16 %v407_v1, %v407_v1  ;;  %v451_v6 = vpack.c.bf16 %v409_v2, %v409_v2 }
  0x61   : > { %623 = vmatpush1.bf16.msra.mxu1 %v443_v0  ;;  %801 = vmatprep.subr.msk.bf16.mxu0 %vm462_vm0, %v450_v3 }
  0x62   : > { %803 = vmatprep.subr.msk.bf16.mxu1 %vm462_vm0, %v452_v4  ;;  %v476_v7 = vsel %vm462_vm0, %v449_v5, 0  ;;  %v482_v8 = vsel %vm462_vm0, %v451_v6, 0 }
  0x63   : > { %582 = vmatpush1.bf16.msra.mxu0 %v476_v7 }
  0x65   : > { %625 = vmatpush1.bf16.msra.mxu1 %v482_v8 }
  0x66   : > { %802 = vmatmul.mubr.msk.bf16.vlgmr.msra.gmra.mrb[4].mxu0 %vm458_vm1, %v1036_v41 }
  0x68   : > { %804 = vmatmul.mubr.msk.bf16.vlgmr.msra.gmra.mrb[4].mxu1 %vm458_vm1, %v1036_v41 }
 0x122   : > { %v521_v9 = vpop.f32.mrb[0].mxu0  ;;  %v564_v10 = vpop.f32.mrb[0].mxu1 }
 0x123   : > { %659 = vst [vmem:[%s1066_s3] sm:$0xff] %v521_v9  ;;  %661 = vst [vmem:[%s1066_s3 + $0x10] sm:$0xff] %v564_v10  ;;  %v523_v11 = vpop.f32.mrb[1].mxu0  ;;  %v566_v41 = vpop.f32.mrb[1].mxu1 }
 0x124   : > { %660 = vst [vmem:[%s1066_s3 + $0x8] sm:$0xff] %v523_v11  ;;  %662 = vst [vmem:[%s1066_s3 + $0x18] sm:$0xff] %v566_v41  ;;  %v525_v12 = vpop.f32.mrb[2].mxu0  ;;  %v568_v13 = vpop.f32.mrb[2].mxu1 }
 0x125   : > { %667 = vst [vmem:[%s1066_s3 + $0x40] sm:$0xf] %v525_v12  ;;  %669 = vst [vmem:[%s1066_s3 + $0x50] sm:$0xf] %v568_v13  ;;  %v527_v14 = vpop.f32.mrb[3].mxu0  ;;  %v570_v15 = vpop.f32.mrb[3].mxu1 }
 0x126   : > { %668 = vst [vmem:[%s1066_s3 + $0x48] sm:$0xf] %v527_v14  ;;  %670 = vst [vmem:[%s1066_s3 + $0x58] sm:$0xf] %v570_v15 }
 0x12a   : > { %v697_v24 = vld [vmem:[%s1066_s3] sm:$0xff] (%p910_p5)  ;;  %v701_v26 = vld [vmem:[%s1066_s3 + $0x10] sm:$0xff] (%p910_p5) }
 0x12b   : > { %v699_v25 = vld [vmem:[%s1066_s3 + $0x8] sm:$0xff] (%p910_p5)  ;;  %v703_v27 = vld [vmem:[%s1066_s3 + $0x18] sm:$0xff] (%p910_p5)  ;;  %698 = vst [vmem:[%s684_s7] sm:$0xff] (%p910_p5), %v697_v24  ;;  %702 = vst [vmem:[%s684_s7 + $0x10] sm:$0xff] (%p910_p5), %v701_v26 }
 0x12c   : > { %700 = vst [vmem:[%s684_s7 + $0x8] sm:$0xff] (%p910_p5), %v699_v25  ;;  %704 = vst [vmem:[%s684_s7 + $0x18] sm:$0xff] (%p910_p5), %v703_v27  ;;  %v713_v31 = vld [vmem:[%s1066_s3 + $0x40] sm:$0xff] (%p910_p5)  ;;  %v717_v33 = vld [vmem:[%s1066_s3 + $0x50] sm:$0xff] (%p910_p5) }
 0x12d   : > { %714 = vst [vmem:[%s684_s7 + $0x200] sm:$0xff] (%p910_p5), %v713_v31  ;;  %v715_v32 = vld [vmem:[%s1066_s3 + $0x48] sm:$0xff] (%p910_p5)  ;;  %v719_v34 = vld [vmem:[%s1066_s3 + $0x58] sm:$0xff] (%p910_p5)  ;;  %718 = vst [vmem:[%s684_s7 + $0x210] sm:$0xff] (%p910_p5), %v717_v33 }
 0x12e   : > { %716 = vst [vmem:[%s684_s7 + $0x208] sm:$0xff] (%p910_p5), %v715_v32  ;;  %720 = vst [vmem:[%s684_s7 + $0x218] sm:$0xff] (%p910_p5), %v719_v34 }
 0x139   : > { %v607_v16 = vpop.f32.mrb[4].mxu0  ;;  %681 = sbr.rel (!%p910_p5) target bundleno = 328 (0x148), region = 55 }
 0x13a   : > { %663 = vst [vmem:[%s1066_s3 + $0x20] sm:$0xff] %v607_v16  ;;  %v609_v17 = vpop.f32.mrb[5].mxu0 }
 0x13b   : > { %v650_v18 = vpop.f32.mrb[4].mxu1  ;;  %664 = vst [vmem:[%s1066_s3 + $0x28] sm:$0xff] %v609_v17  ;;  %v611_v19 = vpop.f32.mrb[6].mxu0 }
 0x13c   : > { %665 = vst [vmem:[%s1066_s3 + $0x30] sm:$0xff] %v650_v18  ;;  %v652_v20 = vpop.f32.mrb[5].mxu1  ;;  %671 = vst [vmem:[%s1066_s3 + $0x60] sm:$0xf] %v611_v19  ;;  %v613_v21 = vpop.f32.mrb[7].mxu0 }
 0x13d   : > { %666 = vst [vmem:[%s1066_s3 + $0x38] sm:$0xff] %v652_v20  ;;  %v654_v22 = vpop.f32.mrb[6].mxu1  ;;  %672 = vst [vmem:[%s1066_s3 + $0x68] sm:$0xf] %v613_v21 }
 0x13e   : > { %673 = vst [vmem:[%s1066_s3 + $0x70] sm:$0xf] %v654_v22  ;;  %v656_v23 = vpop.f32.mrb[7].mxu1 }
 0x13f   : > { %674 = vst [vmem:[%s1066_s3 + $0x78] sm:$0xf] %v656_v23 }
 0x141   : > { %v705_v28 = vld [vmem:[%s1066_s3 + $0x20] sm:$0xff] }
 0x142   : > { %v707_v36 = vld [vmem:[%s1066_s3 + $0x28] sm:$0xff]  ;;  %706 = vst [vmem:[%s684_s7 + $0x20] sm:$0xff] %v705_v28 }
 0x143   : > { %708 = vst [vmem:[%s684_s7 + $0x28] sm:$0xff] %v707_v36  ;;  %v709_v29 = vld [vmem:[%s1066_s3 + $0x30] sm:$0xff]  ;;  %v721_v35 = vld [vmem:[%s1066_s3 + $0x60] sm:$0xff] }
 0x144   : > { %v711_v30 = vld [vmem:[%s1066_s3 + $0x38] sm:$0xff]  ;;  %710 = vst [vmem:[%s684_s7 + $0x30] sm:$0xff] %v709_v29  ;;  %v723_v37 = vld [vmem:[%s1066_s3 + $0x68] sm:$0xff]  ;;  %722 = vst [vmem:[%s684_s7 + $0x220] sm:$0xff] %v721_v35 }
 0x145   : > { %712 = vst [vmem:[%s684_s7 + $0x38] sm:$0xff] %v711_v30  ;;  %v725_v38 = vld [vmem:[%s1066_s3 + $0x70] sm:$0xff]  ;;  %724 = vst [vmem:[%s684_s7 + $0x228] sm:$0xff] %v723_v37 }
 0x146   : > { %726 = vst [vmem:[%s684_s7 + $0x230] sm:$0xff] %v725_v38  ;;  %v727_v39 = vld [vmem:[%s1066_s3 + $0x78] sm:$0xff] }
 0x147   : > { %728 = vst [vmem:[%s684_s7 + $0x238] sm:$0xff] %v727_v39 }
 0x148 PF: > { %p9_p10 = scmp.ge.s32.totalorder %s897_s13, 10   ;;  %s1121_s9 = smov %s858_s10 }
 0x149   : > { %s1122_s10 = smov %s908_s16  ;;  %s1123_s11 = smov %s897_s13 }
 0x14a   :  { %11 = sbr.rel (!%p9_p10) target bundleno = 2 (0x2), region = 109 }

</bundles_post_ra>
